<compile_context>
chip_gen: v7x
topology: tpu7x:2x2x1
jax: 0.10.0
libtpu: 0.0.40
codegen_flags: <defaults>
</compile_context>

<pallas_src>
import jax
import jax.numpy as jnp
from jax.experimental import pallas as pl
from jax.experimental.pallas import tpu as pltpu

LANES = 128          # vreg lane width
SUB = 16             # sublanes per inner sub-chunk (2 f32 vregs per feature)
CHUNK = SUB * LANES  # batch elements handled per inner-loop step (2048)


def _mlp_kernel(x_ref,
                w1_ref, b1_ref,
                w2_ref, b2_ref,
                w3_ref, b3_ref,
                w4_ref, b4_ref,
                o_ref):
    """One batch tile in slab layout.

    x_ref: [F_in,  n_sub, 128] (VMEM), o_ref: [F_out, n_sub, 128] (VMEM),
    w*_ref: [out, in] (SMEM, PyTorch layout), b*_ref: [out] (SMEM).
    """
    f_in = x_ref.shape[0]
    f_out = o_ref.shape[0]
    n_sub = x_ref.shape[1]
    assert n_sub % SUB == 0  # tile construction guarantees this (static)

    def dense_relu(h, w_ref, b_ref):
        # h: list of `in` dense [SUB, 128] f32 arrays (one per input feature).
        #   y[o] = relu( sum_i w[o, i] * h[i] + b[o] )
        # SMEM scalars splat onto full dense vregs -> pure VPU work, no MXU.
        out_dim, in_dim = w_ref.shape
        outs = []
        for o in range(out_dim):
            acc = h[0] * w_ref[o, 0] + b_ref[o]
            for i in range(1, in_dim):
                acc = acc + h[i] * w_ref[o, i]
            outs.append(jnp.maximum(acc, 0.0))
        return outs

    # Inner loop over SUB-sublane sub-chunks: the whole layer chain + softmax
    # for one sub-chunk fits in ~30 vregs, so intermediates never round-trip
    # through VMEM and the kernel stays VALU-bound (not ld/st-slot-bound).
    @pl.loop(0, n_sub // SUB)
    def _(c):
        s0 = pl.multiple_of(c * SUB, SUB)
        h = [x_ref[f, pl.ds(s0, SUB), :] for f in range(f_in)]
        h = dense_relu(h, w1_ref, b1_ref)
        h = dense_relu(h, w2_ref, b2_ref)
        h = dense_relu(h, w3_ref, b3_ref)
        h = dense_relu(h, w4_ref, b4_ref)

        # Softmax over the feature axis == loop over f_out dense arrays ->
        # purely elementwise (no cross-sublane / XLU reduction).
        m = h[0]
        for t in h[1:]:
            m = jnp.maximum(m, t)
        e = [jnp.exp(t - m) for t in h]
        denom = e[0]
        for t in e[1:]:
            denom = denom + t
        # EUP approximate reciprocal + one Newton refinement (~1e-7 rel err).
        inv = pl.reciprocal(denom, approx=True)
        inv = inv * (2.0 - denom * inv)
        for f in range(f_out):
            o_ref[f, pl.ds(s0, SUB), :] = (e[f] * inv).astype(o_ref.dtype)


def network_forward(x, params, *, batch_tile=32768, min_grid_tiles=2,
                    feature_major=False):
    """Eval-mode forward pass via the Pallas kernel.

    x: [B, 5] (PyTorch layout), or [5, B] if `feature_major=True` (also returns
    [5, B]) — the feature-major path removes the wrapper transpose HBM passes.
    """
    (w1, b1, w2, b2, w3, b3, w4, b4) = params
    if feature_major:
        f_in, B = x.shape
        xT = x
    else:
        B, f_in = x.shape
        xT = x.T
    f_out = w4.shape[0]

    # Pad the batch only up to the inner sub-chunk (2048 elems), NOT up to a
    # tile multiple, so batches just past a tile boundary don't pay ~2x in
    # padding; the ragged last grid block is masked by Pallas.
    b_pad = pl.cdiv(B, CHUNK) * CHUNK
    xT = jnp.pad(xT, ((0, 0), (0, b_pad - B)))
    x_slab = xT.reshape(f_in, b_pad // LANES, LANES)  # contiguous reshape: free

    # Batch tiling: big tiles amortize the ~0.35 us per-grid-step overhead;
    # clamp so double-buffered in+out blocks stay <= ~8 MiB (safe for v5e's
    # 16 MiB scoped-VMEM default and v7x's smaller 32/64 MiB budget).
    total_chunks = b_pad // CHUNK
    bytes_per_chunk = (f_in + f_out) * CHUNK * 4 * 2      # in+out, double-buffered
    max_chunks_vmem = max(1, (8 << 20) // bytes_per_chunk)
    chunks_per_tile = max(1, min(batch_tile // CHUNK, total_chunks, max_chunks_vmem))
    n_tiles = pl.cdiv(total_chunks, chunks_per_tile)
    if n_tiles < min_grid_tiles <= total_chunks:
        # Guarantee >= min_grid_tiles so the "parallel" batch axis can shard
        # across both TensorCores on v7x (harmless on single-TC v5e/v6e).
        chunks_per_tile = pl.cdiv(total_chunks, min_grid_tiles)
        n_tiles = pl.cdiv(total_chunks, chunks_per_tile)
    tile_sub = chunks_per_tile * SUB  # sublanes per tile

    smem_spec = pl.BlockSpec(memory_space=pltpu.MemorySpace.SMEM)
    out_slab = pl.pallas_call(
        _mlp_kernel,
        out_shape=jax.ShapeDtypeStruct((f_out, b_pad // LANES, LANES),
                                       jnp.float32),
        grid=(n_tiles,),
        in_specs=[pl.BlockSpec((f_in, tile_sub, LANES), lambda i: (0, i, 0))]
                 + [smem_spec] * 8,
        out_specs=pl.BlockSpec((f_out, tile_sub, LANES), lambda i: (0, i, 0)),
        compiler_params=pltpu.CompilerParams(
            dimension_semantics=("parallel",)),
    )(x_slab, w1, b1, w2, b2, w3, b3, w4, b4)

    outT = out_slab.reshape(f_out, b_pad)[:, :B]
    return outT if feature_major else outT.T


def init_params(key):
    """Deterministic init mimicking PyTorch Linear default U(-1/sqrt(fan_in), +).

    Weights are PyTorch-style [out, in]; biases are 1-D [out] vectors.
    """
    dims = [(5, 10), (10, 5), (5, 5), (5, 5)]  # (fan_in, fan_out) per layer
    params = []
    for fan_in, fan_out in dims:
        key, kw, kb = jax.random.split(key, 3)
        bound = 1.0 / (fan_in ** 0.5)
        w = jax.random.uniform(kw, (fan_out, fan_in), jnp.float32, -bound, bound)
        b = jax.random.uniform(kb, (fan_out,), jnp.float32, -bound, bound)
        params.extend([w, b])
    return tuple(params)


def reference_forward(x, params):
    """Pure-JAX reference for correctness checking."""
    (w1, b1, w2, b2, w3, b3, w4, b4) = params
    h = x
    for w, b in ((w1, b1), (w2, b2), (w3, b3), (w4, b4)):
        h = jnp.maximum(h @ w.T + b, 0.0)
    return jax.nn.softmax(h, axis=1)


if __name__ == "__main__":
    key = jax.random.PRNGKey(0)
    key, kx1, kx2 = jax.random.split(key, 3)
    params = init_params(key)

    # Small batch: single grid tile, block == padded array exactly.
    x_small = jax.random.normal(kx1, (8, 5), dtype=jnp.float32)
    out_small = jax.block_until_ready(network_forward(x_small, params))
    ref_small = reference_forward(x_small, params)
    assert out_small.shape == (8, 5)
    assert jnp.allclose(out_small, ref_small, atol=1e-4, rtol=1e-4), \
        "small-batch mismatch vs reference"
    assert jnp.allclose(jnp.sum(out_small, axis=1), jnp.ones((8,)), atol=1e-4)

    # Larger non-multiple-of-2048 batch: exercises padding, the >=2-tile grid
    # (both v7x TensorCores), the inner sub-chunk loop, and the ragged last
    # block (last tile is only partially valid).
    x_big = jax.random.normal(kx2, (5000, 5), dtype=jnp.float32)
    out_big = jax.block_until_ready(network_forward(x_big, params))
    ref_big = reference_forward(x_big, params)
    assert out_big.shape == (5000, 5)
    assert jnp.allclose(out_big, ref_big, atol=1e-4, rtol=1e-4), \
        "tiled-batch mismatch vs reference"
    assert jnp.allclose(jnp.sum(out_big, axis=1), jnp.ones((5000,)), atol=1e-4)

    # Feature-major path (no wrapper-side transposes at all).
    out_fm = jax.block_until_ready(
        network_forward(x_big.T, params, feature_major=True))
    assert out_fm.shape == (5, 5000)
    assert jnp.allclose(out_fm.T, ref_big, atol=1e-4, rtol=1e-4), \
        "feature-major mismatch vs reference"

    print("KERNEL_OK")
</pallas_src>

<mosaic_0001>
module attributes {stable_mosaic.version = 11 : i64} {
  func.func @_mlp_kernel(%arg0: i32, %arg1: memref<5x16x128xf32, #tpu.memory_space<vmem>>, %arg2: memref<10x5xf32, #tpu.memory_space<smem>>, %arg3: memref<10xf32, #tpu.memory_space<smem>>, %arg4: memref<5x10xf32, #tpu.memory_space<smem>>, %arg5: memref<5xf32, #tpu.memory_space<smem>>, %arg6: memref<5x5xf32, #tpu.memory_space<smem>>, %arg7: memref<5xf32, #tpu.memory_space<smem>>, %arg8: memref<5x5xf32, #tpu.memory_space<smem>>, %arg9: memref<5xf32, #tpu.memory_space<smem>>, %arg10: memref<5x16x128xf32, #tpu.memory_space<vmem>>) attributes {dimension_semantics = [#tpu.dimension_semantics<parallel>], iteration_bounds = array<i64: 1>, scalar_prefetch = 0 : i64, scratch_operands = 0 : i64, tpu.core_type = #tpu.core_type<tc>, window_params = [{transform_indices = @transform_0, window_bounds = array<i64: 5, 16, 128>}, {transform_indices = @transform_1, window_bounds = array<i64: 10, 5>}, {transform_indices = @transform_2, window_bounds = array<i64: 10>}, {transform_indices = @transform_3, window_bounds = array<i64: 5, 10>}, {transform_indices = @transform_4, window_bounds = array<i64: 5>}, {transform_indices = @transform_5, window_bounds = array<i64: 5, 5>}, {transform_indices = @transform_6, window_bounds = array<i64: 5>}, {transform_indices = @transform_7, window_bounds = array<i64: 5, 5>}, {transform_indices = @transform_8, window_bounds = array<i64: 5>}, {transform_indices = @transform_9, window_bounds = array<i64: 5, 16, 128>}]} {
    %c0_i32 = arith.constant 0 : i32
    %c1_i32 = arith.constant 1 : i32
    %0 = arith.muli %c0_i32, %c1_i32 : i32
    %c0_i32_0 = arith.constant 0 : i32
    %1 = arith.addi %c0_i32_0, %0 : i32
    %c16_i32 = arith.constant 16 : i32
    %2 = arith.muli %1, %c16_i32 : i32
    %3 = tpu.assume_multiple %2, 16 : i32
    %c0 = arith.constant 0 : index
    %4 = arith.index_cast %3 : i32 to index
    %c0_1 = arith.constant 0 : index
    %5 = vector.load %arg1[%c0, %4, %c0_1] : memref<5x16x128xf32, #tpu.memory_space<vmem>>, vector<1x16x128xf32>
    %6 = vector.shape_cast %5 : vector<1x16x128xf32> to vector<16x128xf32>
    %c1 = arith.constant 1 : index
    %7 = arith.index_cast %3 : i32 to index
    %c0_2 = arith.constant 0 : index
    %8 = vector.load %arg1[%c1, %7, %c0_2] : memref<5x16x128xf32, #tpu.memory_space<vmem>>, vector<1x16x128xf32>
    %9 = vector.shape_cast %8 : vector<1x16x128xf32> to vector<16x128xf32>
    %c2 = arith.constant 2 : index
    %10 = arith.index_cast %3 : i32 to index
    %c0_3 = arith.constant 0 : index
    %11 = vector.load %arg1[%c2, %10, %c0_3] : memref<5x16x128xf32, #tpu.memory_space<vmem>>, vector<1x16x128xf32>
    %12 = vector.shape_cast %11 : vector<1x16x128xf32> to vector<16x128xf32>
    %c3 = arith.constant 3 : index
    %13 = arith.index_cast %3 : i32 to index
    %c0_4 = arith.constant 0 : index
    %14 = vector.load %arg1[%c3, %13, %c0_4] : memref<5x16x128xf32, #tpu.memory_space<vmem>>, vector<1x16x128xf32>
    %15 = vector.shape_cast %14 : vector<1x16x128xf32> to vector<16x128xf32>
    %c4 = arith.constant 4 : index
    %16 = arith.index_cast %3 : i32 to index
    %c0_5 = arith.constant 0 : index
    %17 = vector.load %arg1[%c4, %16, %c0_5] : memref<5x16x128xf32, #tpu.memory_space<vmem>>, vector<1x16x128xf32>
    %18 = vector.shape_cast %17 : vector<1x16x128xf32> to vector<16x128xf32>
    %c0_6 = arith.constant 0 : index
    %c0_7 = arith.constant 0 : index
    %19 = memref.load %arg2[%c0_6, %c0_7] : memref<10x5xf32, #tpu.memory_space<smem>>
    %20 = vector.broadcast %19 : f32 to vector<16x128xf32>
    %21 = arith.mulf %6, %20 : vector<16x128xf32>
    %c0_8 = arith.constant 0 : index
    %22 = memref.load %arg3[%c0_8] : memref<10xf32, #tpu.memory_space<smem>>
    %23 = vector.broadcast %22 : f32 to vector<16x128xf32>
    %24 = arith.addf %21, %23 : vector<16x128xf32>
    %c0_9 = arith.constant 0 : index
    %c1_10 = arith.constant 1 : index
    %25 = memref.load %arg2[%c0_9, %c1_10] : memref<10x5xf32, #tpu.memory_space<smem>>
    %26 = vector.broadcast %25 : f32 to vector<16x128xf32>
    %27 = arith.mulf %9, %26 : vector<16x128xf32>
    %28 = arith.addf %24, %27 : vector<16x128xf32>
    %c0_11 = arith.constant 0 : index
    %c2_12 = arith.constant 2 : index
    %29 = memref.load %arg2[%c0_11, %c2_12] : memref<10x5xf32, #tpu.memory_space<smem>>
    %30 = vector.broadcast %29 : f32 to vector<16x128xf32>
    %31 = arith.mulf %12, %30 : vector<16x128xf32>
    %32 = arith.addf %28, %31 : vector<16x128xf32>
    %c0_13 = arith.constant 0 : index
    %c3_14 = arith.constant 3 : index
    %33 = memref.load %arg2[%c0_13, %c3_14] : memref<10x5xf32, #tpu.memory_space<smem>>
    %34 = vector.broadcast %33 : f32 to vector<16x128xf32>
    %35 = arith.mulf %15, %34 : vector<16x128xf32>
    %36 = arith.addf %32, %35 : vector<16x128xf32>
    %c0_15 = arith.constant 0 : index
    %c4_16 = arith.constant 4 : index
    %37 = memref.load %arg2[%c0_15, %c4_16] : memref<10x5xf32, #tpu.memory_space<smem>>
    %38 = vector.broadcast %37 : f32 to vector<16x128xf32>
    %39 = arith.mulf %18, %38 : vector<16x128xf32>
    %40 = arith.addf %36, %39 : vector<16x128xf32>
    %cst = arith.constant 0.000000e+00 : f32
    %41 = vector.broadcast %cst : f32 to vector<16x128xf32>
    %42 = arith.maximumf %40, %41 : vector<16x128xf32>
    %c1_17 = arith.constant 1 : index
    %c0_18 = arith.constant 0 : index
    %43 = memref.load %arg2[%c1_17, %c0_18] : memref<10x5xf32, #tpu.memory_space<smem>>
    %44 = vector.broadcast %43 : f32 to vector<16x128xf32>
    %45 = arith.mulf %6, %44 : vector<16x128xf32>
    %c1_19 = arith.constant 1 : index
    %46 = memref.load %arg3[%c1_19] : memref<10xf32, #tpu.memory_space<smem>>
    %47 = vector.broadcast %46 : f32 to vector<16x128xf32>
    %48 = arith.addf %45, %47 : vector<16x128xf32>
    %c1_20 = arith.constant 1 : index
    %c1_21 = arith.constant 1 : index
    %49 = memref.load %arg2[%c1_20, %c1_21] : memref<10x5xf32, #tpu.memory_space<smem>>
    %50 = vector.broadcast %49 : f32 to vector<16x128xf32>
    %51 = arith.mulf %9, %50 : vector<16x128xf32>
    %52 = arith.addf %48, %51 : vector<16x128xf32>
    %c1_22 = arith.constant 1 : index
    %c2_23 = arith.constant 2 : index
    %53 = memref.load %arg2[%c1_22, %c2_23] : memref<10x5xf32, #tpu.memory_space<smem>>
    %54 = vector.broadcast %53 : f32 to vector<16x128xf32>
    %55 = arith.mulf %12, %54 : vector<16x128xf32>
    %56 = arith.addf %52, %55 : vector<16x128xf32>
    %c1_24 = arith.constant 1 : index
    %c3_25 = arith.constant 3 : index
    %57 = memref.load %arg2[%c1_24, %c3_25] : memref<10x5xf32, #tpu.memory_space<smem>>
    %58 = vector.broadcast %57 : f32 to vector<16x128xf32>
    %59 = arith.mulf %15, %58 : vector<16x128xf32>
    %60 = arith.addf %56, %59 : vector<16x128xf32>
    %c1_26 = arith.constant 1 : index
    %c4_27 = arith.constant 4 : index
    %61 = memref.load %arg2[%c1_26, %c4_27] : memref<10x5xf32, #tpu.memory_space<smem>>
    %62 = vector.broadcast %61 : f32 to vector<16x128xf32>
    %63 = arith.mulf %18, %62 : vector<16x128xf32>
    %64 = arith.addf %60, %63 : vector<16x128xf32>
    %cst_28 = arith.constant 0.000000e+00 : f32
    %65 = vector.broadcast %cst_28 : f32 to vector<16x128xf32>
    %66 = arith.maximumf %64, %65 : vector<16x128xf32>
    %c2_29 = arith.constant 2 : index
    %c0_30 = arith.constant 0 : index
    %67 = memref.load %arg2[%c2_29, %c0_30] : memref<10x5xf32, #tpu.memory_space<smem>>
    %68 = vector.broadcast %67 : f32 to vector<16x128xf32>
    %69 = arith.mulf %6, %68 : vector<16x128xf32>
    %c2_31 = arith.constant 2 : index
    %70 = memref.load %arg3[%c2_31] : memref<10xf32, #tpu.memory_space<smem>>
    %71 = vector.broadcast %70 : f32 to vector<16x128xf32>
    %72 = arith.addf %69, %71 : vector<16x128xf32>
    %c2_32 = arith.constant 2 : index
    %c1_33 = arith.constant 1 : index
    %73 = memref.load %arg2[%c2_32, %c1_33] : memref<10x5xf32, #tpu.memory_space<smem>>
    %74 = vector.broadcast %73 : f32 to vector<16x128xf32>
    %75 = arith.mulf %9, %74 : vector<16x128xf32>
    %76 = arith.addf %72, %75 : vector<16x128xf32>
    %c2_34 = arith.constant 2 : index
    %c2_35 = arith.constant 2 : index
    %77 = memref.load %arg2[%c2_34, %c2_35] : memref<10x5xf32, #tpu.memory_space<smem>>
    %78 = vector.broadcast %77 : f32 to vector<16x128xf32>
    %79 = arith.mulf %12, %78 : vector<16x128xf32>
    %80 = arith.addf %76, %79 : vector<16x128xf32>
    %c2_36 = arith.constant 2 : index
    %c3_37 = arith.constant 3 : index
    %81 = memref.load %arg2[%c2_36, %c3_37] : memref<10x5xf32, #tpu.memory_space<smem>>
    %82 = vector.broadcast %81 : f32 to vector<16x128xf32>
    %83 = arith.mulf %15, %82 : vector<16x128xf32>
    %84 = arith.addf %80, %83 : vector<16x128xf32>
    %c2_38 = arith.constant 2 : index
    %c4_39 = arith.constant 4 : index
    %85 = memref.load %arg2[%c2_38, %c4_39] : memref<10x5xf32, #tpu.memory_space<smem>>
    %86 = vector.broadcast %85 : f32 to vector<16x128xf32>
    %87 = arith.mulf %18, %86 : vector<16x128xf32>
    %88 = arith.addf %84, %87 : vector<16x128xf32>
    %cst_40 = arith.constant 0.000000e+00 : f32
    %89 = vector.broadcast %cst_40 : f32 to vector<16x128xf32>
    %90 = arith.maximumf %88, %89 : vector<16x128xf32>
    %c3_41 = arith.constant 3 : index
    %c0_42 = arith.constant 0 : index
    %91 = memref.load %arg2[%c3_41, %c0_42] : memref<10x5xf32, #tpu.memory_space<smem>>
    %92 = vector.broadcast %91 : f32 to vector<16x128xf32>
    %93 = arith.mulf %6, %92 : vector<16x128xf32>
    %c3_43 = arith.constant 3 : index
    %94 = memref.load %arg3[%c3_43] : memref<10xf32, #tpu.memory_space<smem>>
    %95 = vector.broadcast %94 : f32 to vector<16x128xf32>
    %96 = arith.addf %93, %95 : vector<16x128xf32>
    %c3_44 = arith.constant 3 : index
    %c1_45 = arith.constant 1 : index
    %97 = memref.load %arg2[%c3_44, %c1_45] : memref<10x5xf32, #tpu.memory_space<smem>>
    %98 = vector.broadcast %97 : f32 to vector<16x128xf32>
    %99 = arith.mulf %9, %98 : vector<16x128xf32>
    %100 = arith.addf %96, %99 : vector<16x128xf32>
    %c3_46 = arith.constant 3 : index
    %c2_47 = arith.constant 2 : index
    %101 = memref.load %arg2[%c3_46, %c2_47] : memref<10x5xf32, #tpu.memory_space<smem>>
    %102 = vector.broadcast %101 : f32 to vector<16x128xf32>
    %103 = arith.mulf %12, %102 : vector<16x128xf32>
    %104 = arith.addf %100, %103 : vector<16x128xf32>
    %c3_48 = arith.constant 3 : index
    %c3_49 = arith.constant 3 : index
    %105 = memref.load %arg2[%c3_48, %c3_49] : memref<10x5xf32, #tpu.memory_space<smem>>
    %106 = vector.broadcast %105 : f32 to vector<16x128xf32>
    %107 = arith.mulf %15, %106 : vector<16x128xf32>
    %108 = arith.addf %104, %107 : vector<16x128xf32>
    %c3_50 = arith.constant 3 : index
    %c4_51 = arith.constant 4 : index
    %109 = memref.load %arg2[%c3_50, %c4_51] : memref<10x5xf32, #tpu.memory_space<smem>>
    %110 = vector.broadcast %109 : f32 to vector<16x128xf32>
    %111 = arith.mulf %18, %110 : vector<16x128xf32>
    %112 = arith.addf %108, %111 : vector<16x128xf32>
    %cst_52 = arith.constant 0.000000e+00 : f32
    %113 = vector.broadcast %cst_52 : f32 to vector<16x128xf32>
    %114 = arith.maximumf %112, %113 : vector<16x128xf32>
    %c4_53 = arith.constant 4 : index
    %c0_54 = arith.constant 0 : index
    %115 = memref.load %arg2[%c4_53, %c0_54] : memref<10x5xf32, #tpu.memory_space<smem>>
    %116 = vector.broadcast %115 : f32 to vector<16x128xf32>
    %117 = arith.mulf %6, %116 : vector<16x128xf32>
    %c4_55 = arith.constant 4 : index
    %118 = memref.load %arg3[%c4_55] : memref<10xf32, #tpu.memory_space<smem>>
    %119 = vector.broadcast %118 : f32 to vector<16x128xf32>
    %120 = arith.addf %117, %119 : vector<16x128xf32>
    %c4_56 = arith.constant 4 : index
    %c1_57 = arith.constant 1 : index
    %121 = memref.load %arg2[%c4_56, %c1_57] : memref<10x5xf32, #tpu.memory_space<smem>>
    %122 = vector.broadcast %121 : f32 to vector<16x128xf32>
    %123 = arith.mulf %9, %122 : vector<16x128xf32>
    %124 = arith.addf %120, %123 : vector<16x128xf32>
    %c4_58 = arith.constant 4 : index
    %c2_59 = arith.constant 2 : index
    %125 = memref.load %arg2[%c4_58, %c2_59] : memref<10x5xf32, #tpu.memory_space<smem>>
    %126 = vector.broadcast %125 : f32 to vector<16x128xf32>
    %127 = arith.mulf %12, %126 : vector<16x128xf32>
    %128 = arith.addf %124, %127 : vector<16x128xf32>
    %c4_60 = arith.constant 4 : index
    %c3_61 = arith.constant 3 : index
    %129 = memref.load %arg2[%c4_60, %c3_61] : memref<10x5xf32, #tpu.memory_space<smem>>
    %130 = vector.broadcast %129 : f32 to vector<16x128xf32>
    %131 = arith.mulf %15, %130 : vector<16x128xf32>
    %132 = arith.addf %128, %131 : vector<16x128xf32>
    %c4_62 = arith.constant 4 : index
    %c4_63 = arith.constant 4 : index
    %133 = memref.load %arg2[%c4_62, %c4_63] : memref<10x5xf32, #tpu.memory_space<smem>>
    %134 = vector.broadcast %133 : f32 to vector<16x128xf32>
    %135 = arith.mulf %18, %134 : vector<16x128xf32>
    %136 = arith.addf %132, %135 : vector<16x128xf32>
    %cst_64 = arith.constant 0.000000e+00 : f32
    %137 = vector.broadcast %cst_64 : f32 to vector<16x128xf32>
    %138 = arith.maximumf %136, %137 : vector<16x128xf32>
    %c5 = arith.constant 5 : index
    %c0_65 = arith.constant 0 : index
    %139 = memref.load %arg2[%c5, %c0_65] : memref<10x5xf32, #tpu.memory_space<smem>>
    %140 = vector.broadcast %139 : f32 to vector<16x128xf32>
    %141 = arith.mulf %6, %140 : vector<16x128xf32>
    %c5_66 = arith.constant 5 : index
    %142 = memref.load %arg3[%c5_66] : memref<10xf32, #tpu.memory_space<smem>>
    %143 = vector.broadcast %142 : f32 to vector<16x128xf32>
    %144 = arith.addf %141, %143 : vector<16x128xf32>
    %c5_67 = arith.constant 5 : index
    %c1_68 = arith.constant 1 : index
    %145 = memref.load %arg2[%c5_67, %c1_68] : memref<10x5xf32, #tpu.memory_space<smem>>
    %146 = vector.broadcast %145 : f32 to vector<16x128xf32>
    %147 = arith.mulf %9, %146 : vector<16x128xf32>
    %148 = arith.addf %144, %147 : vector<16x128xf32>
    %c5_69 = arith.constant 5 : index
    %c2_70 = arith.constant 2 : index
    %149 = memref.load %arg2[%c5_69, %c2_70] : memref<10x5xf32, #tpu.memory_space<smem>>
    %150 = vector.broadcast %149 : f32 to vector<16x128xf32>
    %151 = arith.mulf %12, %150 : vector<16x128xf32>
    %152 = arith.addf %148, %151 : vector<16x128xf32>
    %c5_71 = arith.constant 5 : index
    %c3_72 = arith.constant 3 : index
    %153 = memref.load %arg2[%c5_71, %c3_72] : memref<10x5xf32, #tpu.memory_space<smem>>
    %154 = vector.broadcast %153 : f32 to vector<16x128xf32>
    %155 = arith.mulf %15, %154 : vector<16x128xf32>
    %156 = arith.addf %152, %155 : vector<16x128xf32>
    %c5_73 = arith.constant 5 : index
    %c4_74 = arith.constant 4 : index
    %157 = memref.load %arg2[%c5_73, %c4_74] : memref<10x5xf32, #tpu.memory_space<smem>>
    %158 = vector.broadcast %157 : f32 to vector<16x128xf32>
    %159 = arith.mulf %18, %158 : vector<16x128xf32>
    %160 = arith.addf %156, %159 : vector<16x128xf32>
    %cst_75 = arith.constant 0.000000e+00 : f32
    %161 = vector.broadcast %cst_75 : f32 to vector<16x128xf32>
    %162 = arith.maximumf %160, %161 : vector<16x128xf32>
    %c6 = arith.constant 6 : index
    %c0_76 = arith.constant 0 : index
    %163 = memref.load %arg2[%c6, %c0_76] : memref<10x5xf32, #tpu.memory_space<smem>>
    %164 = vector.broadcast %163 : f32 to vector<16x128xf32>
    %165 = arith.mulf %6, %164 : vector<16x128xf32>
    %c6_77 = arith.constant 6 : index
    %166 = memref.load %arg3[%c6_77] : memref<10xf32, #tpu.memory_space<smem>>
    %167 = vector.broadcast %166 : f32 to vector<16x128xf32>
    %168 = arith.addf %165, %167 : vector<16x128xf32>
    %c6_78 = arith.constant 6 : index
    %c1_79 = arith.constant 1 : index
    %169 = memref.load %arg2[%c6_78, %c1_79] : memref<10x5xf32, #tpu.memory_space<smem>>
    %170 = vector.broadcast %169 : f32 to vector<16x128xf32>
    %171 = arith.mulf %9, %170 : vector<16x128xf32>
    %172 = arith.addf %168, %171 : vector<16x128xf32>
    %c6_80 = arith.constant 6 : index
    %c2_81 = arith.constant 2 : index
    %173 = memref.load %arg2[%c6_80, %c2_81] : memref<10x5xf32, #tpu.memory_space<smem>>
    %174 = vector.broadcast %173 : f32 to vector<16x128xf32>
    %175 = arith.mulf %12, %174 : vector<16x128xf32>
    %176 = arith.addf %172, %175 : vector<16x128xf32>
    %c6_82 = arith.constant 6 : index
    %c3_83 = arith.constant 3 : index
    %177 = memref.load %arg2[%c6_82, %c3_83] : memref<10x5xf32, #tpu.memory_space<smem>>
    %178 = vector.broadcast %177 : f32 to vector<16x128xf32>
    %179 = arith.mulf %15, %178 : vector<16x128xf32>
    %180 = arith.addf %176, %179 : vector<16x128xf32>
    %c6_84 = arith.constant 6 : index
    %c4_85 = arith.constant 4 : index
    %181 = memref.load %arg2[%c6_84, %c4_85] : memref<10x5xf32, #tpu.memory_space<smem>>
    %182 = vector.broadcast %181 : f32 to vector<16x128xf32>
    %183 = arith.mulf %18, %182 : vector<16x128xf32>
    %184 = arith.addf %180, %183 : vector<16x128xf32>
    %cst_86 = arith.constant 0.000000e+00 : f32
    %185 = vector.broadcast %cst_86 : f32 to vector<16x128xf32>
    %186 = arith.maximumf %184, %185 : vector<16x128xf32>
    %c7 = arith.constant 7 : index
    %c0_87 = arith.constant 0 : index
    %187 = memref.load %arg2[%c7, %c0_87] : memref<10x5xf32, #tpu.memory_space<smem>>
    %188 = vector.broadcast %187 : f32 to vector<16x128xf32>
    %189 = arith.mulf %6, %188 : vector<16x128xf32>
    %c7_88 = arith.constant 7 : index
    %190 = memref.load %arg3[%c7_88] : memref<10xf32, #tpu.memory_space<smem>>
    %191 = vector.broadcast %190 : f32 to vector<16x128xf32>
    %192 = arith.addf %189, %191 : vector<16x128xf32>
    %c7_89 = arith.constant 7 : index
    %c1_90 = arith.constant 1 : index
    %193 = memref.load %arg2[%c7_89, %c1_90] : memref<10x5xf32, #tpu.memory_space<smem>>
    %194 = vector.broadcast %193 : f32 to vector<16x128xf32>
    %195 = arith.mulf %9, %194 : vector<16x128xf32>
    %196 = arith.addf %192, %195 : vector<16x128xf32>
    %c7_91 = arith.constant 7 : index
    %c2_92 = arith.constant 2 : index
    %197 = memref.load %arg2[%c7_91, %c2_92] : memref<10x5xf32, #tpu.memory_space<smem>>
    %198 = vector.broadcast %197 : f32 to vector<16x128xf32>
    %199 = arith.mulf %12, %198 : vector<16x128xf32>
    %200 = arith.addf %196, %199 : vector<16x128xf32>
    %c7_93 = arith.constant 7 : index
    %c3_94 = arith.constant 3 : index
    %201 = memref.load %arg2[%c7_93, %c3_94] : memref<10x5xf32, #tpu.memory_space<smem>>
    %202 = vector.broadcast %201 : f32 to vector<16x128xf32>
    %203 = arith.mulf %15, %202 : vector<16x128xf32>
    %204 = arith.addf %200, %203 : vector<16x128xf32>
    %c7_95 = arith.constant 7 : index
    %c4_96 = arith.constant 4 : index
    %205 = memref.load %arg2[%c7_95, %c4_96] : memref<10x5xf32, #tpu.memory_space<smem>>
    %206 = vector.broadcast %205 : f32 to vector<16x128xf32>
    %207 = arith.mulf %18, %206 : vector<16x128xf32>
    %208 = arith.addf %204, %207 : vector<16x128xf32>
    %cst_97 = arith.constant 0.000000e+00 : f32
    %209 = vector.broadcast %cst_97 : f32 to vector<16x128xf32>
    %210 = arith.maximumf %208, %209 : vector<16x128xf32>
    %c8 = arith.constant 8 : index
    %c0_98 = arith.constant 0 : index
    %211 = memref.load %arg2[%c8, %c0_98] : memref<10x5xf32, #tpu.memory_space<smem>>
    %212 = vector.broadcast %211 : f32 to vector<16x128xf32>
    %213 = arith.mulf %6, %212 : vector<16x128xf32>
    %c8_99 = arith.constant 8 : index
    %214 = memref.load %arg3[%c8_99] : memref<10xf32, #tpu.memory_space<smem>>
    %215 = vector.broadcast %214 : f32 to vector<16x128xf32>
    %216 = arith.addf %213, %215 : vector<16x128xf32>
    %c8_100 = arith.constant 8 : index
    %c1_101 = arith.constant 1 : index
    %217 = memref.load %arg2[%c8_100, %c1_101] : memref<10x5xf32, #tpu.memory_space<smem>>
    %218 = vector.broadcast %217 : f32 to vector<16x128xf32>
    %219 = arith.mulf %9, %218 : vector<16x128xf32>
    %220 = arith.addf %216, %219 : vector<16x128xf32>
    %c8_102 = arith.constant 8 : index
    %c2_103 = arith.constant 2 : index
    %221 = memref.load %arg2[%c8_102, %c2_103] : memref<10x5xf32, #tpu.memory_space<smem>>
    %222 = vector.broadcast %221 : f32 to vector<16x128xf32>
    %223 = arith.mulf %12, %222 : vector<16x128xf32>
    %224 = arith.addf %220, %223 : vector<16x128xf32>
    %c8_104 = arith.constant 8 : index
    %c3_105 = arith.constant 3 : index
    %225 = memref.load %arg2[%c8_104, %c3_105] : memref<10x5xf32, #tpu.memory_space<smem>>
    %226 = vector.broadcast %225 : f32 to vector<16x128xf32>
    %227 = arith.mulf %15, %226 : vector<16x128xf32>
    %228 = arith.addf %224, %227 : vector<16x128xf32>
    %c8_106 = arith.constant 8 : index
    %c4_107 = arith.constant 4 : index
    %229 = memref.load %arg2[%c8_106, %c4_107] : memref<10x5xf32, #tpu.memory_space<smem>>
    %230 = vector.broadcast %229 : f32 to vector<16x128xf32>
    %231 = arith.mulf %18, %230 : vector<16x128xf32>
    %232 = arith.addf %228, %231 : vector<16x128xf32>
    %cst_108 = arith.constant 0.000000e+00 : f32
    %233 = vector.broadcast %cst_108 : f32 to vector<16x128xf32>
    %234 = arith.maximumf %232, %233 : vector<16x128xf32>
    %c9 = arith.constant 9 : index
    %c0_109 = arith.constant 0 : index
    %235 = memref.load %arg2[%c9, %c0_109] : memref<10x5xf32, #tpu.memory_space<smem>>
    %236 = vector.broadcast %235 : f32 to vector<16x128xf32>
    %237 = arith.mulf %6, %236 : vector<16x128xf32>
    %c9_110 = arith.constant 9 : index
    %238 = memref.load %arg3[%c9_110] : memref<10xf32, #tpu.memory_space<smem>>
    %239 = vector.broadcast %238 : f32 to vector<16x128xf32>
    %240 = arith.addf %237, %239 : vector<16x128xf32>
    %c9_111 = arith.constant 9 : index
    %c1_112 = arith.constant 1 : index
    %241 = memref.load %arg2[%c9_111, %c1_112] : memref<10x5xf32, #tpu.memory_space<smem>>
    %242 = vector.broadcast %241 : f32 to vector<16x128xf32>
    %243 = arith.mulf %9, %242 : vector<16x128xf32>
    %244 = arith.addf %240, %243 : vector<16x128xf32>
    %c9_113 = arith.constant 9 : index
    %c2_114 = arith.constant 2 : index
    %245 = memref.load %arg2[%c9_113, %c2_114] : memref<10x5xf32, #tpu.memory_space<smem>>
    %246 = vector.broadcast %245 : f32 to vector<16x128xf32>
    %247 = arith.mulf %12, %246 : vector<16x128xf32>
    %248 = arith.addf %244, %247 : vector<16x128xf32>
    %c9_115 = arith.constant 9 : index
    %c3_116 = arith.constant 3 : index
    %249 = memref.load %arg2[%c9_115, %c3_116] : memref<10x5xf32, #tpu.memory_space<smem>>
    %250 = vector.broadcast %249 : f32 to vector<16x128xf32>
    %251 = arith.mulf %15, %250 : vector<16x128xf32>
    %252 = arith.addf %248, %251 : vector<16x128xf32>
    %c9_117 = arith.constant 9 : index
    %c4_118 = arith.constant 4 : index
    %253 = memref.load %arg2[%c9_117, %c4_118] : memref<10x5xf32, #tpu.memory_space<smem>>
    %254 = vector.broadcast %253 : f32 to vector<16x128xf32>
    %255 = arith.mulf %18, %254 : vector<16x128xf32>
    %256 = arith.addf %252, %255 : vector<16x128xf32>
    %cst_119 = arith.constant 0.000000e+00 : f32
    %257 = vector.broadcast %cst_119 : f32 to vector<16x128xf32>
    %258 = arith.maximumf %256, %257 : vector<16x128xf32>
    %c0_120 = arith.constant 0 : index
    %c0_121 = arith.constant 0 : index
    %259 = memref.load %arg4[%c0_120, %c0_121] : memref<5x10xf32, #tpu.memory_space<smem>>
    %260 = vector.broadcast %259 : f32 to vector<16x128xf32>
    %261 = arith.mulf %42, %260 : vector<16x128xf32>
    %c0_122 = arith.constant 0 : index
    %262 = memref.load %arg5[%c0_122] : memref<5xf32, #tpu.memory_space<smem>>
    %263 = vector.broadcast %262 : f32 to vector<16x128xf32>
    %264 = arith.addf %261, %263 : vector<16x128xf32>
    %c0_123 = arith.constant 0 : index
    %c1_124 = arith.constant 1 : index
    %265 = memref.load %arg4[%c0_123, %c1_124] : memref<5x10xf32, #tpu.memory_space<smem>>
    %266 = vector.broadcast %265 : f32 to vector<16x128xf32>
    %267 = arith.mulf %66, %266 : vector<16x128xf32>
    %268 = arith.addf %264, %267 : vector<16x128xf32>
    %c0_125 = arith.constant 0 : index
    %c2_126 = arith.constant 2 : index
    %269 = memref.load %arg4[%c0_125, %c2_126] : memref<5x10xf32, #tpu.memory_space<smem>>
    %270 = vector.broadcast %269 : f32 to vector<16x128xf32>
    %271 = arith.mulf %90, %270 : vector<16x128xf32>
    %272 = arith.addf %268, %271 : vector<16x128xf32>
    %c0_127 = arith.constant 0 : index
    %c3_128 = arith.constant 3 : index
    %273 = memref.load %arg4[%c0_127, %c3_128] : memref<5x10xf32, #tpu.memory_space<smem>>
    %274 = vector.broadcast %273 : f32 to vector<16x128xf32>
    %275 = arith.mulf %114, %274 : vector<16x128xf32>
    %276 = arith.addf %272, %275 : vector<16x128xf32>
    %c0_129 = arith.constant 0 : index
    %c4_130 = arith.constant 4 : index
    %277 = memref.load %arg4[%c0_129, %c4_130] : memref<5x10xf32, #tpu.memory_space<smem>>
    %278 = vector.broadcast %277 : f32 to vector<16x128xf32>
    %279 = arith.mulf %138, %278 : vector<16x128xf32>
    %280 = arith.addf %276, %279 : vector<16x128xf32>
    %c0_131 = arith.constant 0 : index
    %c5_132 = arith.constant 5 : index
    %281 = memref.load %arg4[%c0_131, %c5_132] : memref<5x10xf32, #tpu.memory_space<smem>>
    %282 = vector.broadcast %281 : f32 to vector<16x128xf32>
    %283 = arith.mulf %162, %282 : vector<16x128xf32>
    %284 = arith.addf %280, %283 : vector<16x128xf32>
    %c0_133 = arith.constant 0 : index
    %c6_134 = arith.constant 6 : index
    %285 = memref.load %arg4[%c0_133, %c6_134] : memref<5x10xf32, #tpu.memory_space<smem>>
    %286 = vector.broadcast %285 : f32 to vector<16x128xf32>
    %287 = arith.mulf %186, %286 : vector<16x128xf32>
    %288 = arith.addf %284, %287 : vector<16x128xf32>
    %c0_135 = arith.constant 0 : index
    %c7_136 = arith.constant 7 : index
    %289 = memref.load %arg4[%c0_135, %c7_136] : memref<5x10xf32, #tpu.memory_space<smem>>
    %290 = vector.broadcast %289 : f32 to vector<16x128xf32>
    %291 = arith.mulf %210, %290 : vector<16x128xf32>
    %292 = arith.addf %288, %291 : vector<16x128xf32>
    %c0_137 = arith.constant 0 : index
    %c8_138 = arith.constant 8 : index
    %293 = memref.load %arg4[%c0_137, %c8_138] : memref<5x10xf32, #tpu.memory_space<smem>>
    %294 = vector.broadcast %293 : f32 to vector<16x128xf32>
    %295 = arith.mulf %234, %294 : vector<16x128xf32>
    %296 = arith.addf %292, %295 : vector<16x128xf32>
    %c0_139 = arith.constant 0 : index
    %c9_140 = arith.constant 9 : index
    %297 = memref.load %arg4[%c0_139, %c9_140] : memref<5x10xf32, #tpu.memory_space<smem>>
    %298 = vector.broadcast %297 : f32 to vector<16x128xf32>
    %299 = arith.mulf %258, %298 : vector<16x128xf32>
    %300 = arith.addf %296, %299 : vector<16x128xf32>
    %cst_141 = arith.constant 0.000000e+00 : f32
    %301 = vector.broadcast %cst_141 : f32 to vector<16x128xf32>
    %302 = arith.maximumf %300, %301 : vector<16x128xf32>
    %c1_142 = arith.constant 1 : index
    %c0_143 = arith.constant 0 : index
    %303 = memref.load %arg4[%c1_142, %c0_143] : memref<5x10xf32, #tpu.memory_space<smem>>
    %304 = vector.broadcast %303 : f32 to vector<16x128xf32>
    %305 = arith.mulf %42, %304 : vector<16x128xf32>
    %c1_144 = arith.constant 1 : index
    %306 = memref.load %arg5[%c1_144] : memref<5xf32, #tpu.memory_space<smem>>
    %307 = vector.broadcast %306 : f32 to vector<16x128xf32>
    %308 = arith.addf %305, %307 : vector<16x128xf32>
    %c1_145 = arith.constant 1 : index
    %c1_146 = arith.constant 1 : index
    %309 = memref.load %arg4[%c1_145, %c1_146] : memref<5x10xf32, #tpu.memory_space<smem>>
    %310 = vector.broadcast %309 : f32 to vector<16x128xf32>
    %311 = arith.mulf %66, %310 : vector<16x128xf32>
    %312 = arith.addf %308, %311 : vector<16x128xf32>
    %c1_147 = arith.constant 1 : index
    %c2_148 = arith.constant 2 : index
    %313 = memref.load %arg4[%c1_147, %c2_148] : memref<5x10xf32, #tpu.memory_space<smem>>
    %314 = vector.broadcast %313 : f32 to vector<16x128xf32>
    %315 = arith.mulf %90, %314 : vector<16x128xf32>
    %316 = arith.addf %312, %315 : vector<16x128xf32>
    %c1_149 = arith.constant 1 : index
    %c3_150 = arith.constant 3 : index
    %317 = memref.load %arg4[%c1_149, %c3_150] : memref<5x10xf32, #tpu.memory_space<smem>>
    %318 = vector.broadcast %317 : f32 to vector<16x128xf32>
    %319 = arith.mulf %114, %318 : vector<16x128xf32>
    %320 = arith.addf %316, %319 : vector<16x128xf32>
    %c1_151 = arith.constant 1 : index
    %c4_152 = arith.constant 4 : index
    %321 = memref.load %arg4[%c1_151, %c4_152] : memref<5x10xf32, #tpu.memory_space<smem>>
    %322 = vector.broadcast %321 : f32 to vector<16x128xf32>
    %323 = arith.mulf %138, %322 : vector<16x128xf32>
    %324 = arith.addf %320, %323 : vector<16x128xf32>
    %c1_153 = arith.constant 1 : index
    %c5_154 = arith.constant 5 : index
    %325 = memref.load %arg4[%c1_153, %c5_154] : memref<5x10xf32, #tpu.memory_space<smem>>
    %326 = vector.broadcast %325 : f32 to vector<16x128xf32>
    %327 = arith.mulf %162, %326 : vector<16x128xf32>
    %328 = arith.addf %324, %327 : vector<16x128xf32>
    %c1_155 = arith.constant 1 : index
    %c6_156 = arith.constant 6 : index
    %329 = memref.load %arg4[%c1_155, %c6_156] : memref<5x10xf32, #tpu.memory_space<smem>>
    %330 = vector.broadcast %329 : f32 to vector<16x128xf32>
    %331 = arith.mulf %186, %330 : vector<16x128xf32>
    %332 = arith.addf %328, %331 : vector<16x128xf32>
    %c1_157 = arith.constant 1 : index
    %c7_158 = arith.constant 7 : index
    %333 = memref.load %arg4[%c1_157, %c7_158] : memref<5x10xf32, #tpu.memory_space<smem>>
    %334 = vector.broadcast %333 : f32 to vector<16x128xf32>
    %335 = arith.mulf %210, %334 : vector<16x128xf32>
    %336 = arith.addf %332, %335 : vector<16x128xf32>
    %c1_159 = arith.constant 1 : index
    %c8_160 = arith.constant 8 : index
    %337 = memref.load %arg4[%c1_159, %c8_160] : memref<5x10xf32, #tpu.memory_space<smem>>
    %338 = vector.broadcast %337 : f32 to vector<16x128xf32>
    %339 = arith.mulf %234, %338 : vector<16x128xf32>
    %340 = arith.addf %336, %339 : vector<16x128xf32>
    %c1_161 = arith.constant 1 : index
    %c9_162 = arith.constant 9 : index
    %341 = memref.load %arg4[%c1_161, %c9_162] : memref<5x10xf32, #tpu.memory_space<smem>>
    %342 = vector.broadcast %341 : f32 to vector<16x128xf32>
    %343 = arith.mulf %258, %342 : vector<16x128xf32>
    %344 = arith.addf %340, %343 : vector<16x128xf32>
    %cst_163 = arith.constant 0.000000e+00 : f32
    %345 = vector.broadcast %cst_163 : f32 to vector<16x128xf32>
    %346 = arith.maximumf %344, %345 : vector<16x128xf32>
    %c2_164 = arith.constant 2 : index
    %c0_165 = arith.constant 0 : index
    %347 = memref.load %arg4[%c2_164, %c0_165] : memref<5x10xf32, #tpu.memory_space<smem>>
    %348 = vector.broadcast %347 : f32 to vector<16x128xf32>
    %349 = arith.mulf %42, %348 : vector<16x128xf32>
    %c2_166 = arith.constant 2 : index
    %350 = memref.load %arg5[%c2_166] : memref<5xf32, #tpu.memory_space<smem>>
    %351 = vector.broadcast %350 : f32 to vector<16x128xf32>
    %352 = arith.addf %349, %351 : vector<16x128xf32>
    %c2_167 = arith.constant 2 : index
    %c1_168 = arith.constant 1 : index
    %353 = memref.load %arg4[%c2_167, %c1_168] : memref<5x10xf32, #tpu.memory_space<smem>>
    %354 = vector.broadcast %353 : f32 to vector<16x128xf32>
    %355 = arith.mulf %66, %354 : vector<16x128xf32>
    %356 = arith.addf %352, %355 : vector<16x128xf32>
    %c2_169 = arith.constant 2 : index
    %c2_170 = arith.constant 2 : index
    %357 = memref.load %arg4[%c2_169, %c2_170] : memref<5x10xf32, #tpu.memory_space<smem>>
    %358 = vector.broadcast %357 : f32 to vector<16x128xf32>
    %359 = arith.mulf %90, %358 : vector<16x128xf32>
    %360 = arith.addf %356, %359 : vector<16x128xf32>
    %c2_171 = arith.constant 2 : index
    %c3_172 = arith.constant 3 : index
    %361 = memref.load %arg4[%c2_171, %c3_172] : memref<5x10xf32, #tpu.memory_space<smem>>
    %362 = vector.broadcast %361 : f32 to vector<16x128xf32>
    %363 = arith.mulf %114, %362 : vector<16x128xf32>
    %364 = arith.addf %360, %363 : vector<16x128xf32>
    %c2_173 = arith.constant 2 : index
    %c4_174 = arith.constant 4 : index
    %365 = memref.load %arg4[%c2_173, %c4_174] : memref<5x10xf32, #tpu.memory_space<smem>>
    %366 = vector.broadcast %365 : f32 to vector<16x128xf32>
    %367 = arith.mulf %138, %366 : vector<16x128xf32>
    %368 = arith.addf %364, %367 : vector<16x128xf32>
    %c2_175 = arith.constant 2 : index
    %c5_176 = arith.constant 5 : index
    %369 = memref.load %arg4[%c2_175, %c5_176] : memref<5x10xf32, #tpu.memory_space<smem>>
    %370 = vector.broadcast %369 : f32 to vector<16x128xf32>
    %371 = arith.mulf %162, %370 : vector<16x128xf32>
    %372 = arith.addf %368, %371 : vector<16x128xf32>
    %c2_177 = arith.constant 2 : index
    %c6_178 = arith.constant 6 : index
    %373 = memref.load %arg4[%c2_177, %c6_178] : memref<5x10xf32, #tpu.memory_space<smem>>
    %374 = vector.broadcast %373 : f32 to vector<16x128xf32>
    %375 = arith.mulf %186, %374 : vector<16x128xf32>
    %376 = arith.addf %372, %375 : vector<16x128xf32>
    %c2_179 = arith.constant 2 : index
    %c7_180 = arith.constant 7 : index
    %377 = memref.load %arg4[%c2_179, %c7_180] : memref<5x10xf32, #tpu.memory_space<smem>>
    %378 = vector.broadcast %377 : f32 to vector<16x128xf32>
    %379 = arith.mulf %210, %378 : vector<16x128xf32>
    %380 = arith.addf %376, %379 : vector<16x128xf32>
    %c2_181 = arith.constant 2 : index
    %c8_182 = arith.constant 8 : index
    %381 = memref.load %arg4[%c2_181, %c8_182] : memref<5x10xf32, #tpu.memory_space<smem>>
    %382 = vector.broadcast %381 : f32 to vector<16x128xf32>
    %383 = arith.mulf %234, %382 : vector<16x128xf32>
    %384 = arith.addf %380, %383 : vector<16x128xf32>
    %c2_183 = arith.constant 2 : index
    %c9_184 = arith.constant 9 : index
    %385 = memref.load %arg4[%c2_183, %c9_184] : memref<5x10xf32, #tpu.memory_space<smem>>
    %386 = vector.broadcast %385 : f32 to vector<16x128xf32>
    %387 = arith.mulf %258, %386 : vector<16x128xf32>
    %388 = arith.addf %384, %387 : vector<16x128xf32>
    %cst_185 = arith.constant 0.000000e+00 : f32
    %389 = vector.broadcast %cst_185 : f32 to vector<16x128xf32>
    %390 = arith.maximumf %388, %389 : vector<16x128xf32>
    %c3_186 = arith.constant 3 : index
    %c0_187 = arith.constant 0 : index
    %391 = memref.load %arg4[%c3_186, %c0_187] : memref<5x10xf32, #tpu.memory_space<smem>>
    %392 = vector.broadcast %391 : f32 to vector<16x128xf32>
    %393 = arith.mulf %42, %392 : vector<16x128xf32>
    %c3_188 = arith.constant 3 : index
    %394 = memref.load %arg5[%c3_188] : memref<5xf32, #tpu.memory_space<smem>>
    %395 = vector.broadcast %394 : f32 to vector<16x128xf32>
    %396 = arith.addf %393, %395 : vector<16x128xf32>
    %c3_189 = arith.constant 3 : index
    %c1_190 = arith.constant 1 : index
    %397 = memref.load %arg4[%c3_189, %c1_190] : memref<5x10xf32, #tpu.memory_space<smem>>
    %398 = vector.broadcast %397 : f32 to vector<16x128xf32>
    %399 = arith.mulf %66, %398 : vector<16x128xf32>
    %400 = arith.addf %396, %399 : vector<16x128xf32>
    %c3_191 = arith.constant 3 : index
    %c2_192 = arith.constant 2 : index
    %401 = memref.load %arg4[%c3_191, %c2_192] : memref<5x10xf32, #tpu.memory_space<smem>>
    %402 = vector.broadcast %401 : f32 to vector<16x128xf32>
    %403 = arith.mulf %90, %402 : vector<16x128xf32>
    %404 = arith.addf %400, %403 : vector<16x128xf32>
    %c3_193 = arith.constant 3 : index
    %c3_194 = arith.constant 3 : index
    %405 = memref.load %arg4[%c3_193, %c3_194] : memref<5x10xf32, #tpu.memory_space<smem>>
    %406 = vector.broadcast %405 : f32 to vector<16x128xf32>
    %407 = arith.mulf %114, %406 : vector<16x128xf32>
    %408 = arith.addf %404, %407 : vector<16x128xf32>
    %c3_195 = arith.constant 3 : index
    %c4_196 = arith.constant 4 : index
    %409 = memref.load %arg4[%c3_195, %c4_196] : memref<5x10xf32, #tpu.memory_space<smem>>
    %410 = vector.broadcast %409 : f32 to vector<16x128xf32>
    %411 = arith.mulf %138, %410 : vector<16x128xf32>
    %412 = arith.addf %408, %411 : vector<16x128xf32>
    %c3_197 = arith.constant 3 : index
    %c5_198 = arith.constant 5 : index
    %413 = memref.load %arg4[%c3_197, %c5_198] : memref<5x10xf32, #tpu.memory_space<smem>>
    %414 = vector.broadcast %413 : f32 to vector<16x128xf32>
    %415 = arith.mulf %162, %414 : vector<16x128xf32>
    %416 = arith.addf %412, %415 : vector<16x128xf32>
    %c3_199 = arith.constant 3 : index
    %c6_200 = arith.constant 6 : index
    %417 = memref.load %arg4[%c3_199, %c6_200] : memref<5x10xf32, #tpu.memory_space<smem>>
    %418 = vector.broadcast %417 : f32 to vector<16x128xf32>
    %419 = arith.mulf %186, %418 : vector<16x128xf32>
    %420 = arith.addf %416, %419 : vector<16x128xf32>
    %c3_201 = arith.constant 3 : index
    %c7_202 = arith.constant 7 : index
    %421 = memref.load %arg4[%c3_201, %c7_202] : memref<5x10xf32, #tpu.memory_space<smem>>
    %422 = vector.broadcast %421 : f32 to vector<16x128xf32>
    %423 = arith.mulf %210, %422 : vector<16x128xf32>
    %424 = arith.addf %420, %423 : vector<16x128xf32>
    %c3_203 = arith.constant 3 : index
    %c8_204 = arith.constant 8 : index
    %425 = memref.load %arg4[%c3_203, %c8_204] : memref<5x10xf32, #tpu.memory_space<smem>>
    %426 = vector.broadcast %425 : f32 to vector<16x128xf32>
    %427 = arith.mulf %234, %426 : vector<16x128xf32>
    %428 = arith.addf %424, %427 : vector<16x128xf32>
    %c3_205 = arith.constant 3 : index
    %c9_206 = arith.constant 9 : index
    %429 = memref.load %arg4[%c3_205, %c9_206] : memref<5x10xf32, #tpu.memory_space<smem>>
    %430 = vector.broadcast %429 : f32 to vector<16x128xf32>
    %431 = arith.mulf %258, %430 : vector<16x128xf32>
    %432 = arith.addf %428, %431 : vector<16x128xf32>
    %cst_207 = arith.constant 0.000000e+00 : f32
    %433 = vector.broadcast %cst_207 : f32 to vector<16x128xf32>
    %434 = arith.maximumf %432, %433 : vector<16x128xf32>
    %c4_208 = arith.constant 4 : index
    %c0_209 = arith.constant 0 : index
    %435 = memref.load %arg4[%c4_208, %c0_209] : memref<5x10xf32, #tpu.memory_space<smem>>
    %436 = vector.broadcast %435 : f32 to vector<16x128xf32>
    %437 = arith.mulf %42, %436 : vector<16x128xf32>
    %c4_210 = arith.constant 4 : index
    %438 = memref.load %arg5[%c4_210] : memref<5xf32, #tpu.memory_space<smem>>
    %439 = vector.broadcast %438 : f32 to vector<16x128xf32>
    %440 = arith.addf %437, %439 : vector<16x128xf32>
    %c4_211 = arith.constant 4 : index
    %c1_212 = arith.constant 1 : index
    %441 = memref.load %arg4[%c4_211, %c1_212] : memref<5x10xf32, #tpu.memory_space<smem>>
    %442 = vector.broadcast %441 : f32 to vector<16x128xf32>
    %443 = arith.mulf %66, %442 : vector<16x128xf32>
    %444 = arith.addf %440, %443 : vector<16x128xf32>
    %c4_213 = arith.constant 4 : index
    %c2_214 = arith.constant 2 : index
    %445 = memref.load %arg4[%c4_213, %c2_214] : memref<5x10xf32, #tpu.memory_space<smem>>
    %446 = vector.broadcast %445 : f32 to vector<16x128xf32>
    %447 = arith.mulf %90, %446 : vector<16x128xf32>
    %448 = arith.addf %444, %447 : vector<16x128xf32>
    %c4_215 = arith.constant 4 : index
    %c3_216 = arith.constant 3 : index
    %449 = memref.load %arg4[%c4_215, %c3_216] : memref<5x10xf32, #tpu.memory_space<smem>>
    %450 = vector.broadcast %449 : f32 to vector<16x128xf32>
    %451 = arith.mulf %114, %450 : vector<16x128xf32>
    %452 = arith.addf %448, %451 : vector<16x128xf32>
    %c4_217 = arith.constant 4 : index
    %c4_218 = arith.constant 4 : index
    %453 = memref.load %arg4[%c4_217, %c4_218] : memref<5x10xf32, #tpu.memory_space<smem>>
    %454 = vector.broadcast %453 : f32 to vector<16x128xf32>
    %455 = arith.mulf %138, %454 : vector<16x128xf32>
    %456 = arith.addf %452, %455 : vector<16x128xf32>
    %c4_219 = arith.constant 4 : index
    %c5_220 = arith.constant 5 : index
    %457 = memref.load %arg4[%c4_219, %c5_220] : memref<5x10xf32, #tpu.memory_space<smem>>
    %458 = vector.broadcast %457 : f32 to vector<16x128xf32>
    %459 = arith.mulf %162, %458 : vector<16x128xf32>
    %460 = arith.addf %456, %459 : vector<16x128xf32>
    %c4_221 = arith.constant 4 : index
    %c6_222 = arith.constant 6 : index
    %461 = memref.load %arg4[%c4_221, %c6_222] : memref<5x10xf32, #tpu.memory_space<smem>>
    %462 = vector.broadcast %461 : f32 to vector<16x128xf32>
    %463 = arith.mulf %186, %462 : vector<16x128xf32>
    %464 = arith.addf %460, %463 : vector<16x128xf32>
    %c4_223 = arith.constant 4 : index
    %c7_224 = arith.constant 7 : index
    %465 = memref.load %arg4[%c4_223, %c7_224] : memref<5x10xf32, #tpu.memory_space<smem>>
    %466 = vector.broadcast %465 : f32 to vector<16x128xf32>
    %467 = arith.mulf %210, %466 : vector<16x128xf32>
    %468 = arith.addf %464, %467 : vector<16x128xf32>
    %c4_225 = arith.constant 4 : index
    %c8_226 = arith.constant 8 : index
    %469 = memref.load %arg4[%c4_225, %c8_226] : memref<5x10xf32, #tpu.memory_space<smem>>
    %470 = vector.broadcast %469 : f32 to vector<16x128xf32>
    %471 = arith.mulf %234, %470 : vector<16x128xf32>
    %472 = arith.addf %468, %471 : vector<16x128xf32>
    %c4_227 = arith.constant 4 : index
    %c9_228 = arith.constant 9 : index
    %473 = memref.load %arg4[%c4_227, %c9_228] : memref<5x10xf32, #tpu.memory_space<smem>>
    %474 = vector.broadcast %473 : f32 to vector<16x128xf32>
    %475 = arith.mulf %258, %474 : vector<16x128xf32>
    %476 = arith.addf %472, %475 : vector<16x128xf32>
    %cst_229 = arith.constant 0.000000e+00 : f32
    %477 = vector.broadcast %cst_229 : f32 to vector<16x128xf32>
    %478 = arith.maximumf %476, %477 : vector<16x128xf32>
    %c0_230 = arith.constant 0 : index
    %c0_231 = arith.constant 0 : index
    %479 = memref.load %arg6[%c0_230, %c0_231] : memref<5x5xf32, #tpu.memory_space<smem>>
    %480 = vector.broadcast %479 : f32 to vector<16x128xf32>
    %481 = arith.mulf %302, %480 : vector<16x128xf32>
    %c0_232 = arith.constant 0 : index
    %482 = memref.load %arg7[%c0_232] : memref<5xf32, #tpu.memory_space<smem>>
    %483 = vector.broadcast %482 : f32 to vector<16x128xf32>
    %484 = arith.addf %481, %483 : vector<16x128xf32>
    %c0_233 = arith.constant 0 : index
    %c1_234 = arith.constant 1 : index
    %485 = memref.load %arg6[%c0_233, %c1_234] : memref<5x5xf32, #tpu.memory_space<smem>>
    %486 = vector.broadcast %485 : f32 to vector<16x128xf32>
    %487 = arith.mulf %346, %486 : vector<16x128xf32>
    %488 = arith.addf %484, %487 : vector<16x128xf32>
    %c0_235 = arith.constant 0 : index
    %c2_236 = arith.constant 2 : index
    %489 = memref.load %arg6[%c0_235, %c2_236] : memref<5x5xf32, #tpu.memory_space<smem>>
    %490 = vector.broadcast %489 : f32 to vector<16x128xf32>
    %491 = arith.mulf %390, %490 : vector<16x128xf32>
    %492 = arith.addf %488, %491 : vector<16x128xf32>
    %c0_237 = arith.constant 0 : index
    %c3_238 = arith.constant 3 : index
    %493 = memref.load %arg6[%c0_237, %c3_238] : memref<5x5xf32, #tpu.memory_space<smem>>
    %494 = vector.broadcast %493 : f32 to vector<16x128xf32>
    %495 = arith.mulf %434, %494 : vector<16x128xf32>
    %496 = arith.addf %492, %495 : vector<16x128xf32>
    %c0_239 = arith.constant 0 : index
    %c4_240 = arith.constant 4 : index
    %497 = memref.load %arg6[%c0_239, %c4_240] : memref<5x5xf32, #tpu.memory_space<smem>>
    %498 = vector.broadcast %497 : f32 to vector<16x128xf32>
    %499 = arith.mulf %478, %498 : vector<16x128xf32>
    %500 = arith.addf %496, %499 : vector<16x128xf32>
    %cst_241 = arith.constant 0.000000e+00 : f32
    %501 = vector.broadcast %cst_241 : f32 to vector<16x128xf32>
    %502 = arith.maximumf %500, %501 : vector<16x128xf32>
    %c1_242 = arith.constant 1 : index
    %c0_243 = arith.constant 0 : index
    %503 = memref.load %arg6[%c1_242, %c0_243] : memref<5x5xf32, #tpu.memory_space<smem>>
    %504 = vector.broadcast %503 : f32 to vector<16x128xf32>
    %505 = arith.mulf %302, %504 : vector<16x128xf32>
    %c1_244 = arith.constant 1 : index
    %506 = memref.load %arg7[%c1_244] : memref<5xf32, #tpu.memory_space<smem>>
    %507 = vector.broadcast %506 : f32 to vector<16x128xf32>
    %508 = arith.addf %505, %507 : vector<16x128xf32>
    %c1_245 = arith.constant 1 : index
    %c1_246 = arith.constant 1 : index
    %509 = memref.load %arg6[%c1_245, %c1_246] : memref<5x5xf32, #tpu.memory_space<smem>>
    %510 = vector.broadcast %509 : f32 to vector<16x128xf32>
    %511 = arith.mulf %346, %510 : vector<16x128xf32>
    %512 = arith.addf %508, %511 : vector<16x128xf32>
    %c1_247 = arith.constant 1 : index
    %c2_248 = arith.constant 2 : index
    %513 = memref.load %arg6[%c1_247, %c2_248] : memref<5x5xf32, #tpu.memory_space<smem>>
    %514 = vector.broadcast %513 : f32 to vector<16x128xf32>
    %515 = arith.mulf %390, %514 : vector<16x128xf32>
    %516 = arith.addf %512, %515 : vector<16x128xf32>
    %c1_249 = arith.constant 1 : index
    %c3_250 = arith.constant 3 : index
    %517 = memref.load %arg6[%c1_249, %c3_250] : memref<5x5xf32, #tpu.memory_space<smem>>
    %518 = vector.broadcast %517 : f32 to vector<16x128xf32>
    %519 = arith.mulf %434, %518 : vector<16x128xf32>
    %520 = arith.addf %516, %519 : vector<16x128xf32>
    %c1_251 = arith.constant 1 : index
    %c4_252 = arith.constant 4 : index
    %521 = memref.load %arg6[%c1_251, %c4_252] : memref<5x5xf32, #tpu.memory_space<smem>>
    %522 = vector.broadcast %521 : f32 to vector<16x128xf32>
    %523 = arith.mulf %478, %522 : vector<16x128xf32>
    %524 = arith.addf %520, %523 : vector<16x128xf32>
    %cst_253 = arith.constant 0.000000e+00 : f32
    %525 = vector.broadcast %cst_253 : f32 to vector<16x128xf32>
    %526 = arith.maximumf %524, %525 : vector<16x128xf32>
    %c2_254 = arith.constant 2 : index
    %c0_255 = arith.constant 0 : index
    %527 = memref.load %arg6[%c2_254, %c0_255] : memref<5x5xf32, #tpu.memory_space<smem>>
    %528 = vector.broadcast %527 : f32 to vector<16x128xf32>
    %529 = arith.mulf %302, %528 : vector<16x128xf32>
    %c2_256 = arith.constant 2 : index
    %530 = memref.load %arg7[%c2_256] : memref<5xf32, #tpu.memory_space<smem>>
    %531 = vector.broadcast %530 : f32 to vector<16x128xf32>
    %532 = arith.addf %529, %531 : vector<16x128xf32>
    %c2_257 = arith.constant 2 : index
    %c1_258 = arith.constant 1 : index
    %533 = memref.load %arg6[%c2_257, %c1_258] : memref<5x5xf32, #tpu.memory_space<smem>>
    %534 = vector.broadcast %533 : f32 to vector<16x128xf32>
    %535 = arith.mulf %346, %534 : vector<16x128xf32>
    %536 = arith.addf %532, %535 : vector<16x128xf32>
    %c2_259 = arith.constant 2 : index
    %c2_260 = arith.constant 2 : index
    %537 = memref.load %arg6[%c2_259, %c2_260] : memref<5x5xf32, #tpu.memory_space<smem>>
    %538 = vector.broadcast %537 : f32 to vector<16x128xf32>
    %539 = arith.mulf %390, %538 : vector<16x128xf32>
    %540 = arith.addf %536, %539 : vector<16x128xf32>
    %c2_261 = arith.constant 2 : index
    %c3_262 = arith.constant 3 : index
    %541 = memref.load %arg6[%c2_261, %c3_262] : memref<5x5xf32, #tpu.memory_space<smem>>
    %542 = vector.broadcast %541 : f32 to vector<16x128xf32>
    %543 = arith.mulf %434, %542 : vector<16x128xf32>
    %544 = arith.addf %540, %543 : vector<16x128xf32>
    %c2_263 = arith.constant 2 : index
    %c4_264 = arith.constant 4 : index
    %545 = memref.load %arg6[%c2_263, %c4_264] : memref<5x5xf32, #tpu.memory_space<smem>>
    %546 = vector.broadcast %545 : f32 to vector<16x128xf32>
    %547 = arith.mulf %478, %546 : vector<16x128xf32>
    %548 = arith.addf %544, %547 : vector<16x128xf32>
    %cst_265 = arith.constant 0.000000e+00 : f32
    %549 = vector.broadcast %cst_265 : f32 to vector<16x128xf32>
    %550 = arith.maximumf %548, %549 : vector<16x128xf32>
    %c3_266 = arith.constant 3 : index
    %c0_267 = arith.constant 0 : index
    %551 = memref.load %arg6[%c3_266, %c0_267] : memref<5x5xf32, #tpu.memory_space<smem>>
    %552 = vector.broadcast %551 : f32 to vector<16x128xf32>
    %553 = arith.mulf %302, %552 : vector<16x128xf32>
    %c3_268 = arith.constant 3 : index
    %554 = memref.load %arg7[%c3_268] : memref<5xf32, #tpu.memory_space<smem>>
    %555 = vector.broadcast %554 : f32 to vector<16x128xf32>
    %556 = arith.addf %553, %555 : vector<16x128xf32>
    %c3_269 = arith.constant 3 : index
    %c1_270 = arith.constant 1 : index
    %557 = memref.load %arg6[%c3_269, %c1_270] : memref<5x5xf32, #tpu.memory_space<smem>>
    %558 = vector.broadcast %557 : f32 to vector<16x128xf32>
    %559 = arith.mulf %346, %558 : vector<16x128xf32>
    %560 = arith.addf %556, %559 : vector<16x128xf32>
    %c3_271 = arith.constant 3 : index
    %c2_272 = arith.constant 2 : index
    %561 = memref.load %arg6[%c3_271, %c2_272] : memref<5x5xf32, #tpu.memory_space<smem>>
    %562 = vector.broadcast %561 : f32 to vector<16x128xf32>
    %563 = arith.mulf %390, %562 : vector<16x128xf32>
    %564 = arith.addf %560, %563 : vector<16x128xf32>
    %c3_273 = arith.constant 3 : index
    %c3_274 = arith.constant 3 : index
    %565 = memref.load %arg6[%c3_273, %c3_274] : memref<5x5xf32, #tpu.memory_space<smem>>
    %566 = vector.broadcast %565 : f32 to vector<16x128xf32>
    %567 = arith.mulf %434, %566 : vector<16x128xf32>
    %568 = arith.addf %564, %567 : vector<16x128xf32>
    %c3_275 = arith.constant 3 : index
    %c4_276 = arith.constant 4 : index
    %569 = memref.load %arg6[%c3_275, %c4_276] : memref<5x5xf32, #tpu.memory_space<smem>>
    %570 = vector.broadcast %569 : f32 to vector<16x128xf32>
    %571 = arith.mulf %478, %570 : vector<16x128xf32>
    %572 = arith.addf %568, %571 : vector<16x128xf32>
    %cst_277 = arith.constant 0.000000e+00 : f32
    %573 = vector.broadcast %cst_277 : f32 to vector<16x128xf32>
    %574 = arith.maximumf %572, %573 : vector<16x128xf32>
    %c4_278 = arith.constant 4 : index
    %c0_279 = arith.constant 0 : index
    %575 = memref.load %arg6[%c4_278, %c0_279] : memref<5x5xf32, #tpu.memory_space<smem>>
    %576 = vector.broadcast %575 : f32 to vector<16x128xf32>
    %577 = arith.mulf %302, %576 : vector<16x128xf32>
    %c4_280 = arith.constant 4 : index
    %578 = memref.load %arg7[%c4_280] : memref<5xf32, #tpu.memory_space<smem>>
    %579 = vector.broadcast %578 : f32 to vector<16x128xf32>
    %580 = arith.addf %577, %579 : vector<16x128xf32>
    %c4_281 = arith.constant 4 : index
    %c1_282 = arith.constant 1 : index
    %581 = memref.load %arg6[%c4_281, %c1_282] : memref<5x5xf32, #tpu.memory_space<smem>>
    %582 = vector.broadcast %581 : f32 to vector<16x128xf32>
    %583 = arith.mulf %346, %582 : vector<16x128xf32>
    %584 = arith.addf %580, %583 : vector<16x128xf32>
    %c4_283 = arith.constant 4 : index
    %c2_284 = arith.constant 2 : index
    %585 = memref.load %arg6[%c4_283, %c2_284] : memref<5x5xf32, #tpu.memory_space<smem>>
    %586 = vector.broadcast %585 : f32 to vector<16x128xf32>
    %587 = arith.mulf %390, %586 : vector<16x128xf32>
    %588 = arith.addf %584, %587 : vector<16x128xf32>
    %c4_285 = arith.constant 4 : index
    %c3_286 = arith.constant 3 : index
    %589 = memref.load %arg6[%c4_285, %c3_286] : memref<5x5xf32, #tpu.memory_space<smem>>
    %590 = vector.broadcast %589 : f32 to vector<16x128xf32>
    %591 = arith.mulf %434, %590 : vector<16x128xf32>
    %592 = arith.addf %588, %591 : vector<16x128xf32>
    %c4_287 = arith.constant 4 : index
    %c4_288 = arith.constant 4 : index
    %593 = memref.load %arg6[%c4_287, %c4_288] : memref<5x5xf32, #tpu.memory_space<smem>>
    %594 = vector.broadcast %593 : f32 to vector<16x128xf32>
    %595 = arith.mulf %478, %594 : vector<16x128xf32>
    %596 = arith.addf %592, %595 : vector<16x128xf32>
    %cst_289 = arith.constant 0.000000e+00 : f32
    %597 = vector.broadcast %cst_289 : f32 to vector<16x128xf32>
    %598 = arith.maximumf %596, %597 : vector<16x128xf32>
    %c0_290 = arith.constant 0 : index
    %c0_291 = arith.constant 0 : index
    %599 = memref.load %arg8[%c0_290, %c0_291] : memref<5x5xf32, #tpu.memory_space<smem>>
    %600 = vector.broadcast %599 : f32 to vector<16x128xf32>
    %601 = arith.mulf %502, %600 : vector<16x128xf32>
    %c0_292 = arith.constant 0 : index
    %602 = memref.load %arg9[%c0_292] : memref<5xf32, #tpu.memory_space<smem>>
    %603 = vector.broadcast %602 : f32 to vector<16x128xf32>
    %604 = arith.addf %601, %603 : vector<16x128xf32>
    %c0_293 = arith.constant 0 : index
    %c1_294 = arith.constant 1 : index
    %605 = memref.load %arg8[%c0_293, %c1_294] : memref<5x5xf32, #tpu.memory_space<smem>>
    %606 = vector.broadcast %605 : f32 to vector<16x128xf32>
    %607 = arith.mulf %526, %606 : vector<16x128xf32>
    %608 = arith.addf %604, %607 : vector<16x128xf32>
    %c0_295 = arith.constant 0 : index
    %c2_296 = arith.constant 2 : index
    %609 = memref.load %arg8[%c0_295, %c2_296] : memref<5x5xf32, #tpu.memory_space<smem>>
    %610 = vector.broadcast %609 : f32 to vector<16x128xf32>
    %611 = arith.mulf %550, %610 : vector<16x128xf32>
    %612 = arith.addf %608, %611 : vector<16x128xf32>
    %c0_297 = arith.constant 0 : index
    %c3_298 = arith.constant 3 : index
    %613 = memref.load %arg8[%c0_297, %c3_298] : memref<5x5xf32, #tpu.memory_space<smem>>
    %614 = vector.broadcast %613 : f32 to vector<16x128xf32>
    %615 = arith.mulf %574, %614 : vector<16x128xf32>
    %616 = arith.addf %612, %615 : vector<16x128xf32>
    %c0_299 = arith.constant 0 : index
    %c4_300 = arith.constant 4 : index
    %617 = memref.load %arg8[%c0_299, %c4_300] : memref<5x5xf32, #tpu.memory_space<smem>>
    %618 = vector.broadcast %617 : f32 to vector<16x128xf32>
    %619 = arith.mulf %598, %618 : vector<16x128xf32>
    %620 = arith.addf %616, %619 : vector<16x128xf32>
    %cst_301 = arith.constant 0.000000e+00 : f32
    %621 = vector.broadcast %cst_301 : f32 to vector<16x128xf32>
    %622 = arith.maximumf %620, %621 : vector<16x128xf32>
    %c1_302 = arith.constant 1 : index
    %c0_303 = arith.constant 0 : index
    %623 = memref.load %arg8[%c1_302, %c0_303] : memref<5x5xf32, #tpu.memory_space<smem>>
    %624 = vector.broadcast %623 : f32 to vector<16x128xf32>
    %625 = arith.mulf %502, %624 : vector<16x128xf32>
    %c1_304 = arith.constant 1 : index
    %626 = memref.load %arg9[%c1_304] : memref<5xf32, #tpu.memory_space<smem>>
    %627 = vector.broadcast %626 : f32 to vector<16x128xf32>
    %628 = arith.addf %625, %627 : vector<16x128xf32>
    %c1_305 = arith.constant 1 : index
    %c1_306 = arith.constant 1 : index
    %629 = memref.load %arg8[%c1_305, %c1_306] : memref<5x5xf32, #tpu.memory_space<smem>>
    %630 = vector.broadcast %629 : f32 to vector<16x128xf32>
    %631 = arith.mulf %526, %630 : vector<16x128xf32>
    %632 = arith.addf %628, %631 : vector<16x128xf32>
    %c1_307 = arith.constant 1 : index
    %c2_308 = arith.constant 2 : index
    %633 = memref.load %arg8[%c1_307, %c2_308] : memref<5x5xf32, #tpu.memory_space<smem>>
    %634 = vector.broadcast %633 : f32 to vector<16x128xf32>
    %635 = arith.mulf %550, %634 : vector<16x128xf32>
    %636 = arith.addf %632, %635 : vector<16x128xf32>
    %c1_309 = arith.constant 1 : index
    %c3_310 = arith.constant 3 : index
    %637 = memref.load %arg8[%c1_309, %c3_310] : memref<5x5xf32, #tpu.memory_space<smem>>
    %638 = vector.broadcast %637 : f32 to vector<16x128xf32>
    %639 = arith.mulf %574, %638 : vector<16x128xf32>
    %640 = arith.addf %636, %639 : vector<16x128xf32>
    %c1_311 = arith.constant 1 : index
    %c4_312 = arith.constant 4 : index
    %641 = memref.load %arg8[%c1_311, %c4_312] : memref<5x5xf32, #tpu.memory_space<smem>>
    %642 = vector.broadcast %641 : f32 to vector<16x128xf32>
    %643 = arith.mulf %598, %642 : vector<16x128xf32>
    %644 = arith.addf %640, %643 : vector<16x128xf32>
    %cst_313 = arith.constant 0.000000e+00 : f32
    %645 = vector.broadcast %cst_313 : f32 to vector<16x128xf32>
    %646 = arith.maximumf %644, %645 : vector<16x128xf32>
    %c2_314 = arith.constant 2 : index
    %c0_315 = arith.constant 0 : index
    %647 = memref.load %arg8[%c2_314, %c0_315] : memref<5x5xf32, #tpu.memory_space<smem>>
    %648 = vector.broadcast %647 : f32 to vector<16x128xf32>
    %649 = arith.mulf %502, %648 : vector<16x128xf32>
    %c2_316 = arith.constant 2 : index
    %650 = memref.load %arg9[%c2_316] : memref<5xf32, #tpu.memory_space<smem>>
    %651 = vector.broadcast %650 : f32 to vector<16x128xf32>
    %652 = arith.addf %649, %651 : vector<16x128xf32>
    %c2_317 = arith.constant 2 : index
    %c1_318 = arith.constant 1 : index
    %653 = memref.load %arg8[%c2_317, %c1_318] : memref<5x5xf32, #tpu.memory_space<smem>>
    %654 = vector.broadcast %653 : f32 to vector<16x128xf32>
    %655 = arith.mulf %526, %654 : vector<16x128xf32>
    %656 = arith.addf %652, %655 : vector<16x128xf32>
    %c2_319 = arith.constant 2 : index
    %c2_320 = arith.constant 2 : index
    %657 = memref.load %arg8[%c2_319, %c2_320] : memref<5x5xf32, #tpu.memory_space<smem>>
    %658 = vector.broadcast %657 : f32 to vector<16x128xf32>
    %659 = arith.mulf %550, %658 : vector<16x128xf32>
    %660 = arith.addf %656, %659 : vector<16x128xf32>
    %c2_321 = arith.constant 2 : index
    %c3_322 = arith.constant 3 : index
    %661 = memref.load %arg8[%c2_321, %c3_322] : memref<5x5xf32, #tpu.memory_space<smem>>
    %662 = vector.broadcast %661 : f32 to vector<16x128xf32>
    %663 = arith.mulf %574, %662 : vector<16x128xf32>
    %664 = arith.addf %660, %663 : vector<16x128xf32>
    %c2_323 = arith.constant 2 : index
    %c4_324 = arith.constant 4 : index
    %665 = memref.load %arg8[%c2_323, %c4_324] : memref<5x5xf32, #tpu.memory_space<smem>>
    %666 = vector.broadcast %665 : f32 to vector<16x128xf32>
    %667 = arith.mulf %598, %666 : vector<16x128xf32>
    %668 = arith.addf %664, %667 : vector<16x128xf32>
    %cst_325 = arith.constant 0.000000e+00 : f32
    %669 = vector.broadcast %cst_325 : f32 to vector<16x128xf32>
    %670 = arith.maximumf %668, %669 : vector<16x128xf32>
    %c3_326 = arith.constant 3 : index
    %c0_327 = arith.constant 0 : index
    %671 = memref.load %arg8[%c3_326, %c0_327] : memref<5x5xf32, #tpu.memory_space<smem>>
    %672 = vector.broadcast %671 : f32 to vector<16x128xf32>
    %673 = arith.mulf %502, %672 : vector<16x128xf32>
    %c3_328 = arith.constant 3 : index
    %674 = memref.load %arg9[%c3_328] : memref<5xf32, #tpu.memory_space<smem>>
    %675 = vector.broadcast %674 : f32 to vector<16x128xf32>
    %676 = arith.addf %673, %675 : vector<16x128xf32>
    %c3_329 = arith.constant 3 : index
    %c1_330 = arith.constant 1 : index
    %677 = memref.load %arg8[%c3_329, %c1_330] : memref<5x5xf32, #tpu.memory_space<smem>>
    %678 = vector.broadcast %677 : f32 to vector<16x128xf32>
    %679 = arith.mulf %526, %678 : vector<16x128xf32>
    %680 = arith.addf %676, %679 : vector<16x128xf32>
    %c3_331 = arith.constant 3 : index
    %c2_332 = arith.constant 2 : index
    %681 = memref.load %arg8[%c3_331, %c2_332] : memref<5x5xf32, #tpu.memory_space<smem>>
    %682 = vector.broadcast %681 : f32 to vector<16x128xf32>
    %683 = arith.mulf %550, %682 : vector<16x128xf32>
    %684 = arith.addf %680, %683 : vector<16x128xf32>
    %c3_333 = arith.constant 3 : index
    %c3_334 = arith.constant 3 : index
    %685 = memref.load %arg8[%c3_333, %c3_334] : memref<5x5xf32, #tpu.memory_space<smem>>
    %686 = vector.broadcast %685 : f32 to vector<16x128xf32>
    %687 = arith.mulf %574, %686 : vector<16x128xf32>
    %688 = arith.addf %684, %687 : vector<16x128xf32>
    %c3_335 = arith.constant 3 : index
    %c4_336 = arith.constant 4 : index
    %689 = memref.load %arg8[%c3_335, %c4_336] : memref<5x5xf32, #tpu.memory_space<smem>>
    %690 = vector.broadcast %689 : f32 to vector<16x128xf32>
    %691 = arith.mulf %598, %690 : vector<16x128xf32>
    %692 = arith.addf %688, %691 : vector<16x128xf32>
    %cst_337 = arith.constant 0.000000e+00 : f32
    %693 = vector.broadcast %cst_337 : f32 to vector<16x128xf32>
    %694 = arith.maximumf %692, %693 : vector<16x128xf32>
    %c4_338 = arith.constant 4 : index
    %c0_339 = arith.constant 0 : index
    %695 = memref.load %arg8[%c4_338, %c0_339] : memref<5x5xf32, #tpu.memory_space<smem>>
    %696 = vector.broadcast %695 : f32 to vector<16x128xf32>
    %697 = arith.mulf %502, %696 : vector<16x128xf32>
    %c4_340 = arith.constant 4 : index
    %698 = memref.load %arg9[%c4_340] : memref<5xf32, #tpu.memory_space<smem>>
    %699 = vector.broadcast %698 : f32 to vector<16x128xf32>
    %700 = arith.addf %697, %699 : vector<16x128xf32>
    %c4_341 = arith.constant 4 : index
    %c1_342 = arith.constant 1 : index
    %701 = memref.load %arg8[%c4_341, %c1_342] : memref<5x5xf32, #tpu.memory_space<smem>>
    %702 = vector.broadcast %701 : f32 to vector<16x128xf32>
    %703 = arith.mulf %526, %702 : vector<16x128xf32>
    %704 = arith.addf %700, %703 : vector<16x128xf32>
    %c4_343 = arith.constant 4 : index
    %c2_344 = arith.constant 2 : index
    %705 = memref.load %arg8[%c4_343, %c2_344] : memref<5x5xf32, #tpu.memory_space<smem>>
    %706 = vector.broadcast %705 : f32 to vector<16x128xf32>
    %707 = arith.mulf %550, %706 : vector<16x128xf32>
    %708 = arith.addf %704, %707 : vector<16x128xf32>
    %c4_345 = arith.constant 4 : index
    %c3_346 = arith.constant 3 : index
    %709 = memref.load %arg8[%c4_345, %c3_346] : memref<5x5xf32, #tpu.memory_space<smem>>
    %710 = vector.broadcast %709 : f32 to vector<16x128xf32>
    %711 = arith.mulf %574, %710 : vector<16x128xf32>
    %712 = arith.addf %708, %711 : vector<16x128xf32>
    %c4_347 = arith.constant 4 : index
    %c4_348 = arith.constant 4 : index
    %713 = memref.load %arg8[%c4_347, %c4_348] : memref<5x5xf32, #tpu.memory_space<smem>>
    %714 = vector.broadcast %713 : f32 to vector<16x128xf32>
    %715 = arith.mulf %598, %714 : vector<16x128xf32>
    %716 = arith.addf %712, %715 : vector<16x128xf32>
    %cst_349 = arith.constant 0.000000e+00 : f32
    %717 = vector.broadcast %cst_349 : f32 to vector<16x128xf32>
    %718 = arith.maximumf %716, %717 : vector<16x128xf32>
    %719 = arith.maximumf %622, %646 : vector<16x128xf32>
    %720 = arith.maximumf %719, %670 : vector<16x128xf32>
    %721 = arith.maximumf %720, %694 : vector<16x128xf32>
    %722 = arith.maximumf %721, %718 : vector<16x128xf32>
    %723 = arith.subf %622, %722 : vector<16x128xf32>
    %724 = math.exp %723 : vector<16x128xf32>
    %725 = arith.subf %646, %722 : vector<16x128xf32>
    %726 = math.exp %725 : vector<16x128xf32>
    %727 = arith.subf %670, %722 : vector<16x128xf32>
    %728 = math.exp %727 : vector<16x128xf32>
    %729 = arith.subf %694, %722 : vector<16x128xf32>
    %730 = math.exp %729 : vector<16x128xf32>
    %731 = arith.subf %718, %722 : vector<16x128xf32>
    %732 = math.exp %731 : vector<16x128xf32>
    %733 = arith.addf %724, %726 : vector<16x128xf32>
    %734 = arith.addf %733, %728 : vector<16x128xf32>
    %735 = arith.addf %734, %730 : vector<16x128xf32>
    %736 = arith.addf %735, %732 : vector<16x128xf32>
    %737 = tpu.reciprocal %736 {approx = true} : vector<16x128xf32> -> vector<16x128xf32>
    %738 = arith.mulf %736, %737 : vector<16x128xf32>
    %cst_350 = arith.constant 2.000000e+00 : f32
    %739 = vector.broadcast %cst_350 : f32 to vector<16x128xf32>
    %740 = arith.subf %739, %738 : vector<16x128xf32>
    %741 = arith.mulf %737, %740 : vector<16x128xf32>
    %742 = arith.mulf %724, %741 : vector<16x128xf32>
    %c0_351 = arith.constant 0 : index
    %743 = arith.index_cast %3 : i32 to index
    %c0_352 = arith.constant 0 : index
    %744 = vector.load %arg10[%c0_351, %743, %c0_352] : memref<5x16x128xf32, #tpu.memory_space<vmem>>, vector<1x16x128xf32>
    %745 = vector.shape_cast %744 : vector<1x16x128xf32> to vector<16x128xf32>
    %746 = vector.shape_cast %742 : vector<16x128xf32> to vector<1x16x128xf32>
    tpu.vector_store %arg10[%c0_351, %743, %c0_352], %746 {strides = array<i32>} : memref<5x16x128xf32, #tpu.memory_space<vmem>>, vector<1x16x128xf32>,
    %747 = arith.mulf %726, %741 : vector<16x128xf32>
    %c1_353 = arith.constant 1 : index
    %748 = arith.index_cast %3 : i32 to index
    %c0_354 = arith.constant 0 : index
    %749 = vector.load %arg10[%c1_353, %748, %c0_354] : memref<5x16x128xf32, #tpu.memory_space<vmem>>, vector<1x16x128xf32>
    %750 = vector.shape_cast %749 : vector<1x16x128xf32> to vector<16x128xf32>
    %751 = vector.shape_cast %747 : vector<16x128xf32> to vector<1x16x128xf32>
    tpu.vector_store %arg10[%c1_353, %748, %c0_354], %751 {strides = array<i32>} : memref<5x16x128xf32, #tpu.memory_space<vmem>>, vector<1x16x128xf32>,
    %752 = arith.mulf %728, %741 : vector<16x128xf32>
    %c2_355 = arith.constant 2 : index
    %753 = arith.index_cast %3 : i32 to index
    %c0_356 = arith.constant 0 : index
    %754 = vector.load %arg10[%c2_355, %753, %c0_356] : memref<5x16x128xf32, #tpu.memory_space<vmem>>, vector<1x16x128xf32>
    %755 = vector.shape_cast %754 : vector<1x16x128xf32> to vector<16x128xf32>
    %756 = vector.shape_cast %752 : vector<16x128xf32> to vector<1x16x128xf32>
    tpu.vector_store %arg10[%c2_355, %753, %c0_356], %756 {strides = array<i32>} : memref<5x16x128xf32, #tpu.memory_space<vmem>>, vector<1x16x128xf32>,
    %757 = arith.mulf %730, %741 : vector<16x128xf32>
    %c3_357 = arith.constant 3 : index
    %758 = arith.index_cast %3 : i32 to index
    %c0_358 = arith.constant 0 : index
    %759 = vector.load %arg10[%c3_357, %758, %c0_358] : memref<5x16x128xf32, #tpu.memory_space<vmem>>, vector<1x16x128xf32>
    %760 = vector.shape_cast %759 : vector<1x16x128xf32> to vector<16x128xf32>
    %761 = vector.shape_cast %757 : vector<16x128xf32> to vector<1x16x128xf32>
    tpu.vector_store %arg10[%c3_357, %758, %c0_358], %761 {strides = array<i32>} : memref<5x16x128xf32, #tpu.memory_space<vmem>>, vector<1x16x128xf32>,
    %762 = arith.mulf %732, %741 : vector<16x128xf32>
    %c4_359 = arith.constant 4 : index
    %763 = arith.index_cast %3 : i32 to index
    %c0_360 = arith.constant 0 : index
    %764 = vector.load %arg10[%c4_359, %763, %c0_360] : memref<5x16x128xf32, #tpu.memory_space<vmem>>, vector<1x16x128xf32>
    %765 = vector.shape_cast %764 : vector<1x16x128xf32> to vector<16x128xf32>
    %766 = vector.shape_cast %762 : vector<16x128xf32> to vector<1x16x128xf32>
    tpu.vector_store %arg10[%c4_359, %763, %c0_360], %766 {strides = array<i32>} : memref<5x16x128xf32, #tpu.memory_space<vmem>>, vector<1x16x128xf32>,
    %c1_i32_361 = arith.constant 1 : i32
    return
  }
  func.func @transform_0(%arg0: i32) -> (i32, i32, i32) {
    %c0_i32 = arith.constant 0 : i32
    %c0_i32_0 = arith.constant 0 : i32
    %c0_i32_1 = arith.constant 0 : i32
    return %c0_i32, %arg0, %c0_i32_0 : i32, i32, i32
  }
  func.func @transform_1(%arg0: i32) -> (i32, i32) {
    %c0_i32 = arith.constant 0 : i32
    %c0_i32_0 = arith.constant 0 : i32
    %c0_i32_1 = arith.constant 0 : i32
    return %c0_i32, %c0_i32_0 : i32, i32
  }
  func.func @transform_2(%arg0: i32) -> i32 {
    %c0_i32 = arith.constant 0 : i32
    %c0_i32_0 = arith.constant 0 : i32
    return %c0_i32 : i32
  }
  func.func @transform_3(%arg0: i32) -> (i32, i32) {
    %c0_i32 = arith.constant 0 : i32
    %c0_i32_0 = arith.constant 0 : i32
    %c0_i32_1 = arith.constant 0 : i32
    return %c0_i32, %c0_i32_0 : i32, i32
  }
  func.func @transform_4(%arg0: i32) -> i32 {
    %c0_i32 = arith.constant 0 : i32
    %c0_i32_0 = arith.constant 0 : i32
    return %c0_i32 : i32
  }
  func.func @transform_5(%arg0: i32) -> (i32, i32) {
    %c0_i32 = arith.constant 0 : i32
    %c0_i32_0 = arith.constant 0 : i32
    %c0_i32_1 = arith.constant 0 : i32
    return %c0_i32, %c0_i32_0 : i32, i32
  }
  func.func @transform_6(%arg0: i32) -> i32 {
    %c0_i32 = arith.constant 0 : i32
    %c0_i32_0 = arith.constant 0 : i32
    return %c0_i32 : i32
  }
  func.func @transform_7(%arg0: i32) -> (i32, i32) {
    %c0_i32 = arith.constant 0 : i32
    %c0_i32_0 = arith.constant 0 : i32
    %c0_i32_1 = arith.constant 0 : i32
    return %c0_i32, %c0_i32_0 : i32, i32
  }
  func.func @transform_8(%arg0: i32) -> i32 {
    %c0_i32 = arith.constant 0 : i32
    %c0_i32_0 = arith.constant 0 : i32
    return %c0_i32 : i32
  }
  func.func @transform_9(%arg0: i32) -> (i32, i32, i32) {
    %c0_i32 = arith.constant 0 : i32
    %c0_i32_0 = arith.constant 0 : i32
    %c0_i32_1 = arith.constant 0 : i32
    return %c0_i32, %arg0, %c0_i32_0 : i32, i32, i32
  }
}

</mosaic_0001>

<bundles_post_ra>
// kernel: tpu_custom_call.1
= control target key start
LH: loop header
LB: loop body
LE: loop exit
PB: predicated region body
PF: predicated region fallthrough
CT: control target
= control target key end

     0   :  { %14 = vsyncpa [#allocation3], 0  ;;  %s2689_s0 = inlined_call_operand.hbm [shape: f32[5,16,128], index: 0, kind: input, shape index: {}]   ;;  %s2690_s1 = inlined_call_operand.vmem [shape: f32[10,5], index: 1, kind: input, shape index: {}]   ;;  %s2691_s2 = inlined_call_operand.vmem [shape: f32[10], index: 2, kind: input, shape index: {}]   ;;  %s2692_s3 = inlined_call_operand.vmem [shape: f32[5,10], index: 3, kind: input, shape index: {}]   ;;  %s2693_s4 = inlined_call_operand.vmem [shape: f32[5], index: 4, kind: input, shape index: {}]   ;;  %s2694_s5 = inlined_call_operand.vmem [shape: f32[5,5], index: 5, kind: input, shape index: {}]   ;;  %s2695_s6 = inlined_call_operand.vmem [shape: f32[5], index: 6, kind: input, shape index: {}]   ;;  %s2696_s7 = inlined_call_operand.vmem [shape: f32[5,5], index: 7, kind: input, shape index: {}]   ;;  %s2697_s8 = inlined_call_operand.vmem [shape: f32[5], index: 8, kind: input, shape index: {}]   ;;  %s2698_s9 = inlined_call_operand.hbm [shape: f32[5,16,128], index: 9, kind: output, shape index: {}]  }
   0x1   :  { %15 = vsyncpa [#allocation5], 0 }
   0x2   :  { %16 = vsyncpa [#allocation8], 0 }
   0x3   :  { %17 = vsyncpa [#allocation11], 0 }
   0x4   :  { %18 = vsyncpa [#allocation14], 0 }
   0x5   :  { %19 = vsyncpa [#allocation17], 0  ;;  %s51_s11 = sshll.u32 %s2691_s2, 4  ;;  %s52_s11 = int_to_ptr.vmem [resolvable:$true] %s51_s11 }
   0x6   :  { %20 = vsyncpa [#allocation4], 0  ;;  %s71_s14 = sshll.u32 %s2693_s4, 4  ;;  %s1472_s15 = scalar_lea.vmem %s52_s11, 16  ;;  %s72_s14 = int_to_ptr.vmem [resolvable:$true] %s71_s14 }
   0x7   :  { %p1473_p0 = scmp.ne.s32.totalorder %s52_s11, %s1472_s15  ;;  %p1477_p1 = scmp.lt.s32.totalorder %s52_s11, %s52_s11 }
   0x8   :  { %p1478_p2 = scmp.lt.s32.totalorder %s1472_s15, %s1472_s15 }
   0xa   :  { %p1479_p3 = por %p1478_p2, %p1477_p1 }
   0xc   :  { %p1480_p4 = pnand %p1479_p3, %p1473_p0 }
   0xe   :  { %1483 = shalt.err (!%p1480_p4)
}
   0xf   :  { %s1626_s16 = smov [#allocation7]   ;;  %s1484_s17 = scalar_lea.vmem %s72_s14, 16 }
  0x10   :  { %54 = dma.vmem_to_smem %s52_s11, 16, %s1626_s16, [#allocation8]  }
  0x11   :  { %p1485_p5 = scmp.ne.s32.totalorder %s72_s14, %s1484_s17  ;;  %p1489_p6 = scmp.lt.s32.totalorder %s72_s14, %s72_s14 }
  0x12   :  { %p1490_p7 = scmp.lt.s32.totalorder %s1484_s17, %s1484_s17 }
  0x14   :  { %p1491_p8 = por %p1490_p7, %p1489_p6 }
  0x16   :  { %p1492_p9 = pnand %p1491_p8, %p1485_p5 }
  0x18   :  { %1495 = shalt.err (!%p1492_p9)
}
  0x19   :  { %s1627_s2 = smov [#allocation10]   ;;  %s91_s19 = sshll.u32 %s2695_s6, 4  ;;  %s92_s19 = int_to_ptr.vmem [resolvable:$true] %s91_s19 }
  0x1a   :  { %74 = dma.vmem_to_smem %s72_s14, 16, %s1627_s2, [#allocation11]  }
  0x1b   :  { %s1496_s20 = scalar_lea.vmem %s92_s19, 16  ;;  %p1501_p11 = scmp.lt.s32.totalorder %s92_s19, %s92_s19 }
  0x1c   :  { %p1497_p10 = scmp.ne.s32.totalorder %s92_s19, %s1496_s20  ;;  %p1502_p12 = scmp.lt.s32.totalorder %s1496_s20, %s1496_s20 }
  0x1e   :  { %p1503_p13 = por %p1502_p12, %p1501_p11 }
  0x20   :  { %p1504_p0 = pnand %p1503_p13, %p1497_p10 }
  0x22   :  { %1507 = shalt.err (!%p1504_p0)
}
  0x23   :  { %s1628_s21 = smov [#allocation13]   ;;  %s1629_s22 = smov [#allocation2]  }
  0x24   :  { %94 = dma.vmem_to_smem %s92_s19, 16, %s1628_s21, [#allocation14]  }
  0x25   :  { %s26_s23 = sshll.u32 %s1629_s22, 4  ;;  %s1508_s26 = scalar_lea.hbm %s2689_s0, 1280  ;;  %s27_s23 = int_to_ptr.vmem [resolvable:$true] %s26_s23 }
  0x26   :  { %p1509_p1 = scmp.ne.s32.totalorder %s2689_s0, %s1508_s26  ;;  %p1512_p2 = scmp.lt.u32.totalorder %s1508_s26, %s2689_s0 }
  0x28   :  { %p1514_p3 = pnand %p1512_p2, %p1509_p1 }
  0x2a   :  { %1517 = shalt.err (!%p1514_p3)
}
  0x2b   :  { %s1518_s30 = scalar_lea.vmem %s27_s23, 1280  ;;  %p1523_p5 = scmp.lt.s32.totalorder %s27_s23, %s27_s23 }
  0x2c   :  { %p1519_p4 = scmp.ne.s32.totalorder %s27_s23, %s1518_s30  ;;  %p1524_p6 = scmp.lt.s32.totalorder %s1518_s30, %s1518_s30 }
  0x2e   :  { %p1525_p7 = por %p1524_p6, %p1523_p5 }
  0x30   :  { %p1526_p8 = pnand %p1525_p7, %p1519_p4 }
  0x32   :  { %1529 = shalt.err (!%p1526_p8)
}
  0x33   :  { %s1630_s10 = smov 128   ;;  %s1631_s11 = smov 8  }
  0x34   :  { %32 = dma.hbm_to_vmem [thread:$0]  %s2689_s0, 1280, %s27_s23, [#allocation3], %s1630_s10, %s1630_s10, %s1631_s11  }
  0x35   :  { %s38_s16 = sshll.u32 %s2690_s1, 4  ;;  %s61_s4 = sshll.u32 %s2692_s3, 4  ;;  %s39_s16 = int_to_ptr.vmem [resolvable:$true] %s38_s16  ;;  %s62_s4 = int_to_ptr.vmem [resolvable:$true] %s61_s4 }
  0x36   :  { %s1530_s18 = scalar_lea.vmem %s39_s16, 256  ;;  %p1535_p10 = scmp.lt.s32.totalorder %s39_s16, %s39_s16 }
  0x37   :  { %p1531_p9 = scmp.ne.s32.totalorder %s39_s16, %s1530_s18  ;;  %p1536_p11 = scmp.lt.s32.totalorder %s1530_s18, %s1530_s18 }
  0x39   :  { %p1537_p12 = por %p1536_p11, %p1535_p10 }
  0x3b   :  { %p1538_p13 = pnand %p1537_p12, %p1531_p9 }
  0x3d   :  { %1541 = shalt.err (!%p1538_p13)
}
  0x3e   :  { %s1632_s19 = smov [#allocation6]   ;;  %s1542_s0 = scalar_lea.vmem %s62_s4, 128 }
  0x3f   :  { %44 = dma.vmem_to_smem %s39_s16, 256, %s1632_s19, [#allocation5], %s1630_s10, %s1630_s10, %s1631_s11  }
  0x40   :  { %p1543_p0 = scmp.ne.s32.totalorder %s62_s4, %s1542_s0  ;;  %p1547_p1 = scmp.lt.s32.totalorder %s62_s4, %s62_s4 }
  0x41   :  { %p1548_p2 = scmp.lt.s32.totalorder %s1542_s0, %s1542_s0 }
  0x43   :  { %p1549_p3 = por %p1548_p2, %p1547_p1 }
  0x45   :  { %p1550_p4 = pnand %p1549_p3, %p1543_p0 }
  0x47   :  { %1553 = shalt.err (!%p1550_p4)
}
  0x48   :  { %s1633_s1 = smov [#allocation9]   ;;  %s81_s21 = sshll.u32 %s2694_s5, 4  ;;  %s82_s21 = int_to_ptr.vmem [resolvable:$true] %s81_s21 }
  0x49   :  { %64 = dma.vmem_to_smem %s62_s4, 128, %s1633_s1, [#allocation8]  }
  0x4a   :  { %s101_s24 = sshll.u32 %s2696_s7, 4  ;;  %s1554_s25 = scalar_lea.vmem %s82_s21, 128  ;;  %s102_s24 = int_to_ptr.vmem [resolvable:$true] %s101_s24 }
  0x4b   :  { %p1555_p5 = scmp.ne.s32.totalorder %s82_s21, %s1554_s25  ;;  %p1559_p6 = scmp.lt.s32.totalorder %s82_s21, %s82_s21 }
  0x4c   :  { %p1560_p7 = scmp.lt.s32.totalorder %s1554_s25, %s1554_s25 }
  0x4e   :  { %p1561_p8 = por %p1560_p7, %p1559_p6 }
  0x50   :  { %p1562_p9 = pnand %p1561_p8, %p1555_p5 }
  0x52   :  { %1565 = shalt.err (!%p1562_p9)
}
  0x53   :  { %s1634_s26 = smov [#allocation12]   ;;  %s1566_s27 = scalar_lea.vmem %s102_s24, 128 }
  0x54   :  { %84 = dma.vmem_to_smem %s82_s21, 128, %s1634_s26, [#allocation11]  }
  0x55   :  { %p1567_p10 = scmp.ne.s32.totalorder %s102_s24, %s1566_s27  ;;  %p1571_p11 = scmp.lt.s32.totalorder %s102_s24, %s102_s24 }
  0x56   :  { %p1572_p12 = scmp.lt.s32.totalorder %s1566_s27, %s1566_s27 }
  0x58   :  { %p1573_p13 = por %p1572_p12, %p1571_p11 }
  0x5a   :  { %p1574_p0 = pnand %p1573_p13, %p1567_p10 }
  0x5c   :  { %1577 = shalt.err (!%p1574_p0)
}
  0x5d   :  { %s1635_s5 = smov [#allocation15]   ;;  %s111_s6 = sshll.u32 %s2697_s8, 4  ;;  %s112_s6 = int_to_ptr.vmem [resolvable:$true] %s111_s6 }
  0x5e   :  { %104 = dma.vmem_to_smem %s102_s24, 128, %s1635_s5, [#allocation14]  }
  0x5f   :  { %s1578_s29 = scalar_lea.vmem %s112_s6, 16  ;;  %p1583_p2 = scmp.lt.s32.totalorder %s112_s6, %s112_s6 }
  0x60   :  { %p1579_p1 = scmp.ne.s32.totalorder %s112_s6, %s1578_s29  ;;  %p1584_p3 = scmp.lt.s32.totalorder %s1578_s29, %s1578_s29 }
  0x62   :  { %p1585_p4 = por %p1584_p3, %p1583_p2 }
  0x64   :  { %p1586_p5 = pnand %p1585_p4, %p1579_p1 }
  0x66   :  { %1589 = shalt.err (!%p1586_p5)
}
  0x67   :  { %s1636_s30 = smov [#allocation16]  }
  0x68   :  { %114 = dma.vmem_to_smem %s112_s6, 16, %s1636_s30, [#allocation17]  }
  0x69   :  { %1612 = dma.done.wait [#allocation3], 1280  }
  0x6a   :  { %1613 = vsyncadd [#allocation3], 4294966016 }
  0x6b   :  { %1614 = dma.done.wait [#allocation5], 256  }
  0x6c   :  { %1615 = vsyncadd [#allocation5], 4294967040 }
  0x6d   :  { %1616 = dma.done.wait [#allocation8], 144  }
  0x6e   :  { %1617 = vsyncadd [#allocation8], 4294967152 }
  0x6f   :  { %1618 = dma.done.wait [#allocation11], 144  }
  0x70   :  { %1619 = vsyncadd [#allocation11], 4294967152 }
  0x71   :  { %1620 = dma.done.wait [#allocation14], 144  }
  0x72   :  { %1621 = vsyncadd [#allocation14], 4294967152 }
  0x73   :  { %1622 = dma.done.wait [#allocation17], 16  }
  0x74   :  { %1623 = vsyncadd [#allocation17], 4294967280 }
  0x75   :  { %142 = sfence }
  0x76   :  { %s161_s8 = sld [smem:[#allocation6]]  ;;  %s1269_s13 = sld [smem:[#allocation6 + $0x1]]  ;;  %v1734_v0 = vld [vmem:[#allocation2] sm:$0xff]  ;;  %v1736_v1 = vld [vmem:[#allocation2 + $0x8] sm:$0xff]  ;;  %v1746_v2 = vld [vmem:[#allocation2 + $0x10] sm:$0xff] }
  0x77   :  { %s165_s12 = sld [smem:[#allocation7]]  ;;  %s1730_s14 = sld [smem:[#allocation6 + $0x2]]  ;;  %v1748_v3 = vld [vmem:[#allocation2 + $0x18] sm:$0xff]  ;;  %v1756_v8 = vld [vmem:[#allocation2 + $0x20] sm:$0xff]  ;;  %v1758_v9 = vld [vmem:[#allocation2 + $0x28] sm:$0xff] }
  0x78   :  { %s1732_s15 = sld [smem:[#allocation6 + $0x3]]  ;;  %s1738_s16 = sld [smem:[#allocation6 + $0x4]]  ;;  %v1760_v10 = vld [vmem:[#allocation2 + $0x30] sm:$0xff]  ;;  %v1762_v12 = vld [vmem:[#allocation2 + $0x38] sm:$0xff]  ;;  %v1764_v13 = vld [vmem:[#allocation2 + $0x40] sm:$0xff] }
  0x79   :  { %s1740_s17 = sld [smem:[#allocation6 + $0x80]]  ;;  %s1742_s2 = sld [smem:[#allocation7 + $0x1]]  ;;  %v1766_v14 = vld [vmem:[#allocation2 + $0x48] sm:$0xff] }
  0x7a   :  { %s1744_s4 = sld [smem:[#allocation6 + $0x81]]  ;;  %s1750_s18 = sld [smem:[#allocation6 + $0x82]] }
  0x7b   :  { %s1752_s19 = sld [smem:[#allocation6 + $0x83]]  ;;  %s1774_s0 = sld [smem:[#allocation6 + $0x84]] }
  0x7c   :  { %v162_v4 = vstv %s161_s8  ;;  %v170_v11 = vstv %s1269_s13  ;;  %s1776_s1 = sld [smem:[#allocation6 + $0x100]]  ;;  %s1784_s3 = sld [smem:[#allocation7 + $0x2]] }
  0x7d   :  { %v163_v5 = vmul.f32 %v162_v4, %v1734_v0  ;;  %v164_v6 = vmul.f32 %v162_v4, %v1736_v1  ;;  %v166_v7 = vstv %s165_s12  ;;  %v171_v17 = vmul.f32 %v170_v11, %v1746_v2  ;;  %s1786_s20 = sld [smem:[#allocation6 + $0x101]]  ;;  %s1790_s21 = sld [smem:[#allocation6 + $0x102]] }
  0x7e   :  { %v172_v18 = vmul.f32 %v170_v11, %v1748_v3  ;;  %v176_v19 = vstv %s1730_s14  ;;  %v182_v20 = vstv %s1732_s15  ;;  %v188_v21 = vstv %s1738_s16  ;;  %s1792_s22 = sld [smem:[#allocation6 + $0x103]]  ;;  %s1804_s23 = sld [smem:[#allocation6 + $0x104]] }
  0x7f   :  { %v167_v15 = vadd.f32 %v166_v7, %v163_v5  ;;  %v168_v16 = vadd.f32 %v166_v7, %v164_v6  ;;  %v196_v22 = vstv %s1740_s17  ;;  %v177_v25 = vmul.f32 %v176_v19, %v1756_v8  ;;  %s1806_s24 = sld [smem:[#allocation6 + $0x180]]  ;;  %s1816_s25 = sld [smem:[#allocation7 + $0x3]] }
  0x80   :  { %v178_v26 = vmul.f32 %v176_v19, %v1758_v9  ;;  %v183_v27 = vmul.f32 %v182_v20, %v1760_v10  ;;  %v184_v28 = vmul.f32 %v182_v20, %v1762_v12  ;;  %v189_v29 = vmul.f32 %v188_v21, %v1764_v13  ;;  %s1818_s26 = sld [smem:[#allocation6 + $0x181]]  ;;  %s1822_s27 = sld [smem:[#allocation6 + $0x182]] }
  0x81   :  { %v173_v23 = vadd.f32 %v171_v17, %v167_v15  ;;  %v174_v24 = vadd.f32 %v172_v18, %v168_v16  ;;  %v190_v30 = vmul.f32 %v188_v21, %v1766_v14  ;;  %v197_v33 = vmul.f32 %v196_v22, %v1734_v0  ;;  %s1824_s5 = sld [smem:[#allocation6 + $0x183]]  ;;  %s1836_s7 = sld [smem:[#allocation6 + $0x184]] }
  0x82   :  { %v198_v34 = vmul.f32 %v196_v22, %v1736_v1  ;;  %v200_v35 = vstv %s1742_s2  ;;  %v204_v36 = vstv %s1744_s4  ;;  %v210_v37 = vstv %s1750_s18  ;;  %s1838_s28 = sld [smem:[#allocation6 + $0x200]]  ;;  %s1848_s6 = sld [smem:[#allocation7 + $0x4]] }
  0x83   :  { %v179_v31 = vadd.f32 %v177_v25, %v173_v23  ;;  %v180_v32 = vadd.f32 %v178_v26, %v174_v24  ;;  %v216_v38 = vstv %s1752_s19  ;;  %v201_v41 = vadd.f32 %v200_v35, %v197_v33  ;;  %s1850_s29 = sld [smem:[#allocation6 + $0x201]]  ;;  %s1854_s30 = sld [smem:[#allocation6 + $0x202]] }
  0x84   :  { %v202_v42 = vadd.f32 %v200_v35, %v198_v34  ;;  %v205_v43 = vmul.f32 %v204_v36, %v1746_v2  ;;  %v206_v44 = vmul.f32 %v204_v36, %v1748_v3  ;;  %v211_v45 = vmul.f32 %v210_v37, %v1756_v8  ;;  %s1856_s8 = sld [smem:[#allocation6 + $0x203]]  ;;  %s1868_s12 = sld [smem:[#allocation6 + $0x204]] }
  0x85   :  { %v185_v39 = vadd.f32 %v183_v27, %v179_v31  ;;  %v186_v40 = vadd.f32 %v184_v28, %v180_v32  ;;  %v212_v46 = vmul.f32 %v210_v37, %v1758_v9  ;;  %v217_v49 = vmul.f32 %v216_v38, %v1760_v10  ;;  %s1870_s13 = sld [smem:[#allocation6 + $0x280]]  ;;  %s1880_s14 = sld [smem:[#allocation7 + $0x5]] }
  0x86   :  { %v218_v50 = vmul.f32 %v216_v38, %v1762_v12  ;;  %v207_v51 = vadd.f32 %v205_v43, %v201_v41  ;;  %v208_v52 = vadd.f32 %v206_v44, %v202_v42  ;;  %v222_v53 = vstv %s1774_s0  ;;  %s1882_s15 = sld [smem:[#allocation6 + $0x281]]  ;;  %s1886_s16 = sld [smem:[#allocation6 + $0x282]] }
  0x87   :  { %v191_v47 = vadd.f32 %v189_v29, %v185_v39  ;;  %v192_v48 = vadd.f32 %v190_v30, %v186_v40  ;;  %v230_v54 = vstv %s1776_s1  ;;  %v223_v57 = vmul.f32 %v222_v53, %v1764_v13  ;;  %s1888_s17 = sld [smem:[#allocation6 + $0x283]]  ;;  %s1900_s2 = sld [smem:[#allocation6 + $0x284]] }
  0x88   :  { %v224_v58 = vmul.f32 %v222_v53, %v1766_v14  ;;  %v213_v59 = vadd.f32 %v211_v45, %v207_v51  ;;  %v214_v60 = vadd.f32 %v212_v46, %v208_v52  ;;  %v231_v61 = vmul.f32 %v230_v54, %v1734_v0  ;;  %s1902_s4 = sld [smem:[#allocation6 + $0x300]]  ;;  %s1912_s18 = sld [smem:[#allocation7 + $0x6]] }
  0x89   :  { %v1810_v55 = vmax.f32 %v191_v47, 0.0  ;;  %v1812_v56 = vmax.f32 %v192_v48, 0.0  ;;  %v232_v62 = vmul.f32 %v230_v54, %v1736_v1  ;;  %v234_v63 = vstv %s1784_s3  ;;  %s1914_s19 = sld [smem:[#allocation6 + $0x301]]  ;;  %s1918_s0 = sld [smem:[#allocation6 + $0x302]] }
  0x8a   :  { %v238_v4 = vstv %s1786_s20  ;;  %v244_v5 = vstv %s1790_s21  ;;  %v250_v6 = vstv %s1792_s22  ;;  %v219_v7 = vadd.f32 %v217_v49, %v213_v59  ;;  %s1920_s1 = sld [smem:[#allocation6 + $0x303]]  ;;  %s1932_s3 = sld [smem:[#allocation6 + $0x304]] }
  0x8b   :  { %v220_v11 = vadd.f32 %v218_v50, %v214_v60  ;;  %v235_v15 = vadd.f32 %v234_v63, %v231_v61  ;;  %v236_v16 = vadd.f32 %v234_v63, %v232_v62  ;;  %v239_v17 = vmul.f32 %v238_v4, %v1746_v2  ;;  %s1934_s20 = sld [smem:[#allocation6 + $0x380]]  ;;  %s1944_s21 = sld [smem:[#allocation7 + $0x7]] }
  0x8c   :  { %v240_v18 = vmul.f32 %v238_v4, %v1748_v3  ;;  %v245_v19 = vmul.f32 %v244_v5, %v1756_v8  ;;  %v246_v20 = vmul.f32 %v244_v5, %v1758_v9  ;;  %v225_v21 = vadd.f32 %v223_v57, %v219_v7  ;;  %s1946_s22 = sld [smem:[#allocation6 + $0x381]] }
  0x8d   :  { %v226_v22 = vadd.f32 %v224_v58, %v220_v11  ;;  %v251_v23 = vmul.f32 %v250_v6, %v1760_v10  ;;  %v252_v24 = vmul.f32 %v250_v6, %v1762_v12  ;;  %v241_v25 = vadd.f32 %v239_v17, %v235_v15 }
  0x8e   :  { %v242_v26 = vadd.f32 %v240_v18, %v236_v16  ;;  %v256_v27 = vstv %s1804_s23  ;;  %v264_v28 = vstv %s1806_s24  ;;  %v1842_v29 = vmax.f32 %v225_v21, 0.0  ;;  %s1950_s23 = sld [smem:[#allocation6 + $0x382]]  ;;  %s1952_s24 = sld [smem:[#allocation6 + $0x383]] }
  0x8f   :  { %v1844_v30 = vmax.f32 %v226_v22, 0.0  ;;  %v257_v31 = vmul.f32 %v256_v27, %v1764_v13  ;;  %v258_v32 = vmul.f32 %v256_v27, %v1766_v14  ;;  %v247_v33 = vadd.f32 %v245_v19, %v241_v25 }
  0x90   :  { %v248_v34 = vadd.f32 %v246_v20, %v242_v26  ;;  %v265_v35 = vmul.f32 %v264_v28, %v1734_v0  ;;  %v266_v36 = vmul.f32 %v264_v28, %v1736_v1  ;;  %v268_v37 = vstv %s1816_s25  ;;  %s1964_s25 = sld [smem:[#allocation6 + $0x384]] }
  0x91   :  { %v272_v38 = vstv %s1818_s26  ;;  %v278_v39 = vstv %s1822_s27  ;;  %v284_v40 = vstv %s1824_s5  ;;  %v253_v41 = vadd.f32 %v251_v23, %v247_v33  ;;  %s1966_s26 = sld [smem:[#allocation6 + $0x400]]  ;;  %s1978_s5 = sld [smem:[#allocation6 + $0x401]] }
  0x92   :  { %v254_v42 = vadd.f32 %v252_v24, %v248_v34  ;;  %v269_v43 = vadd.f32 %v268_v37, %v265_v35  ;;  %v270_v44 = vadd.f32 %v268_v37, %v266_v36  ;;  %v273_v45 = vmul.f32 %v272_v38, %v1746_v2  ;;  %s1976_s27 = sld [smem:[#allocation7 + $0x8]] }
  0x93   :  { %v274_v46 = vmul.f32 %v272_v38, %v1748_v3  ;;  %v279_v47 = vmul.f32 %v278_v39, %v1756_v8  ;;  %v280_v48 = vmul.f32 %v278_v39, %v1758_v9  ;;  %v259_v49 = vadd.f32 %v257_v31, %v253_v41 }
  0x94   :  { %v260_v50 = vadd.f32 %v258_v32, %v254_v42  ;;  %v285_v51 = vmul.f32 %v284_v40, %v1760_v10  ;;  %v286_v52 = vmul.f32 %v284_v40, %v1762_v12  ;;  %v275_v53 = vadd.f32 %v273_v45, %v269_v43 }
  0x95   :  { %v276_v54 = vadd.f32 %v274_v46, %v270_v44  ;;  %v290_v57 = vstv %s1836_s7  ;;  %v298_v58 = vstv %s1838_s28  ;;  %v1874_v59 = vmax.f32 %v259_v49, 0.0  ;;  %s1982_s7 = sld [smem:[#allocation6 + $0x402]]  ;;  %s1984_s28 = sld [smem:[#allocation6 + $0x403]] }
  0x96   :  { %v1876_v60 = vmax.f32 %v260_v50, 0.0  ;;  %v291_v61 = vmul.f32 %v290_v57, %v1764_v13  ;;  %v292_v62 = vmul.f32 %v290_v57, %v1766_v14  ;;  %v281_v63 = vadd.f32 %v279_v47, %v275_v53 }
  0x97   :  { %v282_v4 = vadd.f32 %v280_v48, %v276_v54  ;;  %v299_v5 = vmul.f32 %v298_v58, %v1734_v0  ;;  %v300_v6 = vmul.f32 %v298_v58, %v1736_v1  ;;  %v302_v7 = vstv %s1848_s6  ;;  %s1996_s6 = sld [smem:[#allocation6 + $0x404]] }
  0x98   :  { %v306_v11 = vstv %s1850_s29  ;;  %v312_v15 = vstv %s1854_s30  ;;  %v318_v16 = vstv %s1856_s8  ;;  %v287_v17 = vadd.f32 %v285_v51, %v281_v63  ;;  %s1998_s29 = sld [smem:[#allocation6 + $0x480]]  ;;  %s2008_s30 = sld [smem:[#allocation7 + $0x9]] }
  0x99   :  { %v288_v18 = vadd.f32 %v286_v52, %v282_v4  ;;  %v303_v19 = vadd.f32 %v302_v7, %v299_v5  ;;  %v304_v20 = vadd.f32 %v302_v7, %v300_v6  ;;  %v307_v21 = vmul.f32 %v306_v11, %v1746_v2  ;;  %s2010_s8 = sld [smem:[#allocation6 + $0x481]] }
  0x9a   :  { %v308_v22 = vmul.f32 %v306_v11, %v1748_v3  ;;  %v313_v23 = vmul.f32 %v312_v15, %v1756_v8  ;;  %v314_v24 = vmul.f32 %v312_v15, %v1758_v9  ;;  %v293_v25 = vadd.f32 %v291_v61, %v287_v17 }
  0x9b   :  { %v294_v26 = vadd.f32 %v292_v62, %v288_v18  ;;  %v319_v27 = vmul.f32 %v318_v16, %v1760_v10  ;;  %v320_v28 = vmul.f32 %v318_v16, %v1762_v12  ;;  %v309_v31 = vadd.f32 %v307_v21, %v303_v19 }
  0x9c   :  { %v310_v32 = vadd.f32 %v308_v22, %v304_v20  ;;  %v324_v33 = vstv %s1868_s12  ;;  %v332_v34 = vstv %s1870_s13  ;;  %v1906_v35 = vmax.f32 %v293_v25, 0.0  ;;  %s2014_s12 = sld [smem:[#allocation6 + $0x482]]  ;;  %s2016_s13 = sld [smem:[#allocation6 + $0x483]] }
  0x9d   :  { %v1908_v36 = vmax.f32 %v294_v26, 0.0  ;;  %v325_v37 = vmul.f32 %v324_v33, %v1764_v13  ;;  %v326_v38 = vmul.f32 %v324_v33, %v1766_v14  ;;  %v315_v39 = vadd.f32 %v313_v23, %v309_v31 }
  0x9e   :  { %v316_v40 = vadd.f32 %v314_v24, %v310_v32  ;;  %v333_v41 = vmul.f32 %v332_v34, %v1734_v0  ;;  %v334_v42 = vmul.f32 %v332_v34, %v1736_v1  ;;  %v336_v43 = vstv %s1880_s14  ;;  %s2028_s14 = sld [smem:[#allocation6 + $0x484]] }
  0x9f   :  { %v340_v44 = vstv %s1882_s15  ;;  %v346_v45 = vstv %s1886_s16  ;;  %v352_v46 = vstv %s1888_s17  ;;  %v321_v47 = vadd.f32 %v319_v27, %v315_v39  ;;  %s2030_s15 = sld [smem:[#allocation9]]  ;;  %s2042_s17 = sld [smem:[#allocation9 + $0x1]] }
  0xa0   :  { %v322_v48 = vadd.f32 %v320_v28, %v316_v40  ;;  %v337_v49 = vadd.f32 %v336_v43, %v333_v41  ;;  %v338_v50 = vadd.f32 %v336_v43, %v334_v42  ;;  %v341_v51 = vmul.f32 %v340_v44, %v1746_v2  ;;  %s2040_s16 = sld [smem:[#allocation10]] }
  0xa1   :  { %v342_v52 = vmul.f32 %v340_v44, %v1748_v3  ;;  %v347_v53 = vmul.f32 %v346_v45, %v1756_v8  ;;  %v348_v54 = vmul.f32 %v346_v45, %v1758_v9  ;;  %v327_v57 = vadd.f32 %v325_v37, %v321_v47 }
  0xa2   :  { %v328_v58 = vadd.f32 %v326_v38, %v322_v48  ;;  %v353_v61 = vmul.f32 %v352_v46, %v1760_v10  ;;  %v354_v62 = vmul.f32 %v352_v46, %v1762_v12  ;;  %v343_v63 = vadd.f32 %v341_v51, %v337_v49 }
  0xa3   :  { %v344_v4 = vadd.f32 %v342_v52, %v338_v50  ;;  %v358_v5 = vstv %s1900_s2  ;;  %v366_v6 = vstv %s1902_s4  ;;  %v1938_v7 = vmax.f32 %v327_v57, 0.0  ;;  %s2046_s2 = sld [smem:[#allocation9 + $0x2]]  ;;  %s2048_s4 = sld [smem:[#allocation9 + $0x3]] }
  0xa4   :  { %v1940_v11 = vmax.f32 %v328_v58, 0.0  ;;  %v359_v15 = vmul.f32 %v358_v5, %v1764_v13  ;;  %v360_v16 = vmul.f32 %v358_v5, %v1766_v14  ;;  %v349_v17 = vadd.f32 %v347_v53, %v343_v63 }
  0xa5   :  { %v350_v18 = vadd.f32 %v348_v54, %v344_v4  ;;  %v367_v19 = vmul.f32 %v366_v6, %v1734_v0  ;;  %v368_v20 = vmul.f32 %v366_v6, %v1736_v1  ;;  %v370_v21 = vstv %s1912_s18  ;;  %s2060_s18 = sld [smem:[#allocation9 + $0x4]] }
  0xa6   :  { %v374_v22 = vstv %s1914_s19  ;;  %v380_v23 = vstv %s1918_s0  ;;  %v386_v24 = vstv %s1920_s1  ;;  %v355_v25 = vadd.f32 %v353_v61, %v349_v17  ;;  %s2062_s19 = sld [smem:[#allocation9 + $0x5]]  ;;  %s2072_s0 = sld [smem:[#allocation9 + $0x6]] }
  0xa7   :  { %v356_v26 = vadd.f32 %v354_v62, %v350_v18  ;;  %v371_v27 = vadd.f32 %v370_v21, %v367_v19  ;;  %v372_v28 = vadd.f32 %v370_v21, %v368_v20  ;;  %v375_v31 = vmul.f32 %v374_v22, %v1746_v2  ;;  %s2074_s1 = sld [smem:[#allocation9 + $0x7]] }
  0xa8   :  { %v376_v32 = vmul.f32 %v374_v22, %v1748_v3  ;;  %v381_v33 = vmul.f32 %v380_v23, %v1756_v8  ;;  %v382_v34 = vmul.f32 %v380_v23, %v1758_v9  ;;  %v361_v37 = vadd.f32 %v359_v15, %v355_v25 }
  0xa9   :  { %v362_v38 = vadd.f32 %v360_v16, %v356_v26  ;;  %v387_v39 = vmul.f32 %v386_v24, %v1760_v10  ;;  %v388_v40 = vmul.f32 %v386_v24, %v1762_v12  ;;  %v377_v41 = vadd.f32 %v375_v31, %v371_v27 }
  0xaa   :  { %v378_v42 = vadd.f32 %v376_v32, %v372_v28  ;;  %v392_v43 = vstv %s1932_s3  ;;  %v400_v44 = vstv %s1934_s20  ;;  %v1970_v45 = vmax.f32 %v361_v37, 0.0  ;;  %s2078_s3 = sld [smem:[#allocation9 + $0x8]]  ;;  %s2080_s20 = sld [smem:[#allocation9 + $0x9]] }
  0xab   :  { %v1972_v46 = vmax.f32 %v362_v38, 0.0  ;;  %v393_v47 = vmul.f32 %v392_v43, %v1764_v13  ;;  %v394_v48 = vmul.f32 %v392_v43, %v1766_v14  ;;  %v383_v49 = vadd.f32 %v381_v33, %v377_v41 }
  0xac   :  { %v384_v50 = vadd.f32 %v382_v34, %v378_v42  ;;  %v401_v51 = vmul.f32 %v400_v44, %v1734_v0  ;;  %v402_v52 = vmul.f32 %v400_v44, %v1736_v1  ;;  %v404_v53 = vstv %s1944_s21  ;;  %s2090_s21 = sld [smem:[#allocation9 + $0x80]] }
  0xad   :  { %v408_v54 = vstv %s1946_s22  ;;  %v414_v57 = vstv %s1950_s23  ;;  %v420_v58 = vstv %s1952_s24  ;;  %v389_v61 = vadd.f32 %v387_v39, %v383_v49  ;;  %s2092_s22 = sld [smem:[#allocation10 + $0x1]]  ;;  %s2098_s24 = sld [smem:[#allocation9 + $0x82]] }
  0xae   :  { %v390_v62 = vadd.f32 %v388_v40, %v384_v50  ;;  %v405_v63 = vadd.f32 %v404_v53, %v401_v51  ;;  %v406_v4 = vadd.f32 %v404_v53, %v402_v52  ;;  %v409_v5 = vmul.f32 %v408_v54, %v1746_v2  ;;  %s2096_s23 = sld [smem:[#allocation9 + $0x81]] }
  0xaf   :  { %v410_v6 = vmul.f32 %v408_v54, %v1748_v3  ;;  %v415_v15 = vmul.f32 %v414_v57, %v1756_v8  ;;  %v416_v16 = vmul.f32 %v414_v57, %v1758_v9  ;;  %v395_v17 = vadd.f32 %v393_v47, %v389_v61 }
  0xb0   :  { %v396_v18 = vadd.f32 %v394_v48, %v390_v62  ;;  %v421_v19 = vmul.f32 %v420_v58, %v1760_v10  ;;  %v422_v20 = vmul.f32 %v420_v58, %v1762_v12  ;;  %v411_v21 = vadd.f32 %v409_v5, %v405_v63 }
  0xb1   :  { %v412_v22 = vadd.f32 %v410_v6, %v406_v4  ;;  %v426_v23 = vstv %s1964_s25  ;;  %v434_v24 = vstv %s1966_s26  ;;  %v2002_v25 = vmax.f32 %v395_v17, 0.0  ;;  %s2110_s25 = sld [smem:[#allocation9 + $0x83]]  ;;  %s2112_s26 = sld [smem:[#allocation9 + $0x84]] }
  0xb2   :  { %v2004_v26 = vmax.f32 %v396_v18, 0.0  ;;  %v427_v27 = vmul.f32 %v426_v23, %v1764_v13  ;;  %v428_v28 = vmul.f32 %v426_v23, %v1766_v14  ;;  %v417_v31 = vadd.f32 %v415_v15, %v411_v21 }
  0xb3   :  { %v418_v32 = vadd.f32 %v416_v16, %v412_v22  ;;  %v435_v33 = vmul.f32 %v434_v24, %v1734_v0  ;;  %v436_v34 = vmul.f32 %v434_v24, %v1736_v1  ;;  %v438_v37 = vstv %s1976_s27  ;;  %s2118_s27 = sld [smem:[#allocation9 + $0x85]] }
  0xb4   :  { %v442_v38 = vstv %s1978_s5  ;;  %v448_v39 = vstv %s1982_s7  ;;  %v454_v40 = vstv %s1984_s28  ;;  %v423_v41 = vadd.f32 %v421_v19, %v417_v31  ;;  %s2120_s5 = sld [smem:[#allocation9 + $0x86]]  ;;  %s2136_s7 = sld [smem:[#allocation9 + $0x87]] }
  0xb5   :  { %v424_v42 = vadd.f32 %v422_v20, %v418_v32  ;;  %v439_v43 = vadd.f32 %v438_v37, %v435_v33  ;;  %v440_v44 = vadd.f32 %v438_v37, %v436_v34  ;;  %v443_v47 = vmul.f32 %v442_v38, %v1746_v2  ;;  %s2138_s28 = sld [smem:[#allocation9 + $0x88]] }
  0xb6   :  { %v444_v48 = vmul.f32 %v442_v38, %v1748_v3  ;;  %v449_v49 = vmul.f32 %v448_v39, %v1756_v8  ;;  %v450_v50 = vmul.f32 %v448_v39, %v1758_v9  ;;  %v429_v51 = vadd.f32 %v427_v27, %v423_v41 }
  0xb7   :  { %v430_v52 = vadd.f32 %v428_v28, %v424_v42  ;;  %v455_v53 = vmul.f32 %v454_v40, %v1760_v10  ;;  %v456_v54 = vmul.f32 %v454_v40, %v1762_v12  ;;  %v445_v57 = vadd.f32 %v443_v47, %v439_v43 }
  0xb8   :  { %v446_v58 = vadd.f32 %v444_v48, %v440_v44  ;;  %v460_v61 = vstv %s1996_s6  ;;  %v468_v62 = vstv %s1998_s29  ;;  %v2034_v63 = vmax.f32 %v429_v51, 0.0  ;;  %s2144_s6 = sld [smem:[#allocation9 + $0x89]]  ;;  %s2146_s29 = sld [smem:[#allocation9 + $0x100]] }
  0xb9   :  { %v2036_v4 = vmax.f32 %v430_v52, 0.0  ;;  %v461_v5 = vmul.f32 %v460_v61, %v1764_v13  ;;  %v462_v6 = vmul.f32 %v460_v61, %v1766_v14  ;;  %v451_v15 = vadd.f32 %v449_v49, %v445_v57 }
  0xba   :  { %v452_v16 = vadd.f32 %v450_v50, %v446_v58  ;;  %v469_v17 = vmul.f32 %v468_v62, %v1734_v0  ;;  %v470_v18 = vmul.f32 %v468_v62, %v1736_v1  ;;  %v472_v19 = vstv %s2008_s30  ;;  %s2156_s30 = sld [smem:[#allocation10 + $0x2]] }
  0xbb   :  { %v476_v20 = vstv %s2010_s8  ;;  %v482_v21 = vstv %s2014_s12  ;;  %v488_v22 = vstv %s2016_s13  ;;  %v457_v23 = vadd.f32 %v455_v53, %v451_v15  ;;  %s2158_s8 = sld [smem:[#allocation9 + $0x101]]  ;;  %s2164_s12 = sld [smem:[#allocation9 + $0x102]] }
  0xbc   :  { %v458_v24 = vadd.f32 %v456_v54, %v452_v16  ;;  %v473_v27 = vadd.f32 %v472_v19, %v469_v17  ;;  %v474_v28 = vadd.f32 %v472_v19, %v470_v18  ;;  %v477_v31 = vmul.f32 %v476_v20, %v1746_v2  ;;  %s2166_s13 = sld [smem:[#allocation9 + $0x103]] }
  0xbd   :  { %v478_v0 = vmul.f32 %v476_v20, %v1748_v3  ;;  %v483_v1 = vmul.f32 %v482_v21, %v1756_v8  ;;  %v484_v32 = vmul.f32 %v482_v21, %v1758_v9  ;;  %v463_v33 = vadd.f32 %v461_v5, %v457_v23 }
  0xbe   :  { %v464_v34 = vadd.f32 %v462_v6, %v458_v24  ;;  %v489_v37 = vmul.f32 %v488_v22, %v1760_v10  ;;  %v490_v38 = vmul.f32 %v488_v22, %v1762_v12  ;;  %v479_v39 = vadd.f32 %v477_v31, %v473_v27 }
  0xbf   :  { %v480_v40 = vadd.f32 %v478_v0, %v474_v28  ;;  %v494_v2 = vstv %s2028_s14  ;;  %v502_v3 = vstv %s2030_s15  ;;  %v2066_v8 = vmax.f32 %v463_v33, 0.0  ;;  %s2176_s14 = sld [smem:[#allocation9 + $0x104]]  ;;  %s2178_s15 = sld [smem:[#allocation9 + $0x105]] }
  0xc0   :  { %v2068_v9 = vmax.f32 %v464_v34, 0.0  ;;  %v495_v10 = vmul.f32 %v494_v2, %v1764_v13  ;;  %v496_v12 = vmul.f32 %v494_v2, %v1766_v14  ;;  %v485_v41 = vadd.f32 %v483_v1, %v479_v39 }
  0xc1   :  { %v486_v42 = vadd.f32 %v484_v32, %v480_v40  ;;  %v503_v43 = vmul.f32 %v502_v3, %v1810_v55  ;;  %v504_v44 = vmul.f32 %v502_v3, %v1812_v56  ;;  %v506_v47 = vstv %s2040_s16  ;;  %s2190_s16 = sld [smem:[#allocation9 + $0x106]] }
  0xc2   :  { %v510_v48 = vstv %s2042_s17  ;;  %v516_v49 = vstv %s2046_s2  ;;  %v522_v13 = vstv %s2048_s4  ;;  %v491_v50 = vadd.f32 %v489_v37, %v485_v41  ;;  %s2192_s17 = sld [smem:[#allocation9 + $0x107]]  ;;  %s2198_s2 = sld [smem:[#allocation9 + $0x108]] }
  0xc3   :  { %v492_v14 = vadd.f32 %v490_v38, %v486_v42  ;;  %v507_v51 = vadd.f32 %v506_v47, %v503_v43  ;;  %v508_v52 = vadd.f32 %v506_v47, %v504_v44  ;;  %v511_v53 = vmul.f32 %v510_v48, %v1842_v29  ;;  %s2200_s4 = sld [smem:[#allocation9 + $0x109]] }
  0xc4   :  { %v512_v54 = vmul.f32 %v510_v48, %v1844_v30  ;;  %v517_v57 = vmul.f32 %v516_v49, %v1874_v59  ;;  %v518_v58 = vmul.f32 %v516_v49, %v1876_v60  ;;  %v497_v61 = vadd.f32 %v495_v10, %v491_v50 }
  0xc5   :  { %v498_v62 = vadd.f32 %v496_v12, %v492_v14  ;;  %v523_v5 = vmul.f32 %v522_v13, %v1906_v35  ;;  %v524_v6 = vmul.f32 %v522_v13, %v1908_v36  ;;  %v513_v15 = vadd.f32 %v511_v53, %v507_v51 }
  0xc6   :  { %v514_v16 = vadd.f32 %v512_v54, %v508_v52  ;;  %v528_v17 = vstv %s2060_s18  ;;  %v534_v18 = vstv %s2062_s19  ;;  %v2102_v19 = vmax.f32 %v497_v61, 0.0  ;;  %s2204_s18 = sld [smem:[#allocation9 + $0x180]]  ;;  %s2206_s19 = sld [smem:[#allocation10 + $0x3]] }
  0xc7   :  { %v2104_v20 = vmax.f32 %v498_v62, 0.0  ;;  %v529_v21 = vmul.f32 %v528_v17, %v1938_v7  ;;  %v530_v22 = vmul.f32 %v528_v17, %v1940_v11  ;;  %v519_v23 = vadd.f32 %v517_v57, %v513_v15 }
  0xc8   :  { %v520_v24 = vadd.f32 %v518_v58, %v514_v16  ;;  %v535_v27 = vmul.f32 %v534_v18, %v1970_v45  ;;  %v536_v28 = vmul.f32 %v534_v18, %v1972_v46  ;;  %v540_v31 = vstv %s2072_s0  ;;  %s2214_s0 = sld [smem:[#allocation9 + $0x181]] }
  0xc9   :  { %v546_v0 = vstv %s2074_s1  ;;  %v552_v1 = vstv %s2078_s3  ;;  %v558_v32 = vstv %s2080_s20  ;;  %v525_v33 = vadd.f32 %v523_v5, %v519_v23  ;;  %s2216_s1 = sld [smem:[#allocation9 + $0x182]]  ;;  %s2228_s3 = sld [smem:[#allocation9 + $0x183]] }
  0xca   :  { %v526_v34 = vadd.f32 %v524_v6, %v520_v24  ;;  %v541_v37 = vmul.f32 %v540_v31, %v2002_v25  ;;  %v542_v38 = vmul.f32 %v540_v31, %v2004_v26  ;;  %v547_v39 = vmul.f32 %v546_v0, %v2034_v63  ;;  %s2230_s20 = sld [smem:[#allocation9 + $0x184]] }
  0xcb   :  { %v548_v40 = vmul.f32 %v546_v0, %v2036_v4  ;;  %v553_v2 = vmul.f32 %v552_v1, %v2066_v8  ;;  %v554_v3 = vmul.f32 %v552_v1, %v2068_v9  ;;  %v531_v10 = vadd.f32 %v529_v21, %v525_v33 }
  0xcc   :  { %v532_v12 = vadd.f32 %v530_v22, %v526_v34  ;;  %v559_v41 = vmul.f32 %v558_v32, %v2102_v19  ;;  %v560_v42 = vmul.f32 %v558_v32, %v2104_v20  ;;  %v566_v43 = vstv %s2090_s21  ;;  %s2240_s21 = sld [smem:[#allocation9 + $0x185]] }
  0xcd   :  { %v570_v44 = vstv %s2092_s22  ;;  %v574_v47 = vstv %s2096_s23  ;;  %v580_v48 = vstv %s2098_s24  ;;  %v537_v49 = vadd.f32 %v535_v27, %v531_v10  ;;  %s2242_s22 = sld [smem:[#allocation9 + $0x186]]  ;;  %s2252_s23 = sld [smem:[#allocation9 + $0x187]] }
  0xce   :  { %v538_v13 = vadd.f32 %v536_v28, %v532_v12  ;;  %v567_v50 = vmul.f32 %v566_v43, %v1810_v55  ;;  %v568_v14 = vmul.f32 %v566_v43, %v1812_v56  ;;  %v575_v51 = vmul.f32 %v574_v47, %v1842_v29  ;;  %s2254_s24 = sld [smem:[#allocation9 + $0x188]] }
  0xcf   :  { %v576_v52 = vmul.f32 %v574_v47, %v1844_v30  ;;  %v581_v53 = vmul.f32 %v580_v48, %v1874_v59  ;;  %v582_v54 = vmul.f32 %v580_v48, %v1876_v60  ;;  %v543_v57 = vadd.f32 %v541_v37, %v537_v49 }
  0xd0   :  { %v544_v58 = vadd.f32 %v542_v38, %v538_v13  ;;  %v571_v61 = vadd.f32 %v570_v44, %v567_v50  ;;  %v572_v62 = vadd.f32 %v570_v44, %v568_v14  ;;  %v586_v5 = vstv %s2110_s25  ;;  %s2260_s25 = sld [smem:[#allocation9 + $0x189]] }
  0xd1   :  { %v592_v6 = vstv %s2112_s26  ;;  %v598_v15 = vstv %s2118_s27  ;;  %v604_v16 = vstv %s2120_s5  ;;  %v549_v17 = vadd.f32 %v547_v39, %v543_v57  ;;  %s2262_s26 = sld [smem:[#allocation9 + $0x200]]  ;;  %s2268_s27 = sld [smem:[#allocation10 + $0x4]] }
  0xd2   :  { %v550_v18 = vadd.f32 %v548_v40, %v544_v58  ;;  %v577_v21 = vadd.f32 %v575_v51, %v571_v61  ;;  %v578_v22 = vadd.f32 %v576_v52, %v572_v62  ;;  %v587_v23 = vmul.f32 %v586_v5, %v1906_v35  ;;  %s2270_s5 = sld [smem:[#allocation9 + $0x201]] }
  0xd3   :  { %v588_v24 = vmul.f32 %v586_v5, %v1908_v36  ;;  %v593_v27 = vmul.f32 %v592_v6, %v1938_v7  ;;  %v594_v28 = vmul.f32 %v592_v6, %v1940_v11  ;;  %v555_v31 = vadd.f32 %v553_v2, %v549_v17 }
  0xd4   :  { %v556_v0 = vadd.f32 %v554_v3, %v550_v18  ;;  %v583_v1 = vadd.f32 %v581_v53, %v577_v21  ;;  %v584_v32 = vadd.f32 %v582_v54, %v578_v22  ;;  %v599_v33 = vmul.f32 %v598_v15, %v1970_v45 }
  0xd5   :  { %v600_v34 = vmul.f32 %v598_v15, %v1972_v46  ;;  %v605_v37 = vmul.f32 %v604_v16, %v2002_v25  ;;  %v606_v38 = vmul.f32 %v604_v16, %v2004_v26  ;;  %v561_v39 = vadd.f32 %v559_v41, %v555_v31 }
  0xd6   :  { %v562_v40 = vadd.f32 %v560_v42, %v556_v0  ;;  %v589_v2 = vadd.f32 %v587_v23, %v583_v1  ;;  %v590_v10 = vadd.f32 %v588_v24, %v584_v32  ;;  %v610_v3 = vstv %s2136_s7  ;;  %s2276_s7 = sld [smem:[#allocation9 + $0x202]] }
  0xd7   :  { %v616_v12 = vstv %s2138_s28  ;;  %v622_v43 = vstv %s2144_s6  ;;  %v630_v44 = vstv %s2146_s29  ;;  %v2172_v47 = vmax.f32 %v561_v39, 0.0  ;;  %s2278_s28 = sld [smem:[#allocation9 + $0x203]]  ;;  %s2292_s6 = sld [smem:[#allocation9 + $0x204]] }
  0xd8   :  { %v2174_v48 = vmax.f32 %v562_v40, 0.0  ;;  %v595_v49 = vadd.f32 %v593_v27, %v589_v2  ;;  %v596_v13 = vadd.f32 %v594_v28, %v590_v10  ;;  %v611_v41 = vmul.f32 %v610_v3, %v2034_v63  ;;  %s2294_s29 = sld [smem:[#allocation9 + $0x205]] }
  0xd9   :  { %v612_v42 = vmul.f32 %v610_v3, %v2036_v4  ;;  %v617_v50 = vmul.f32 %v616_v12, %v2066_v8  ;;  %v618_v14 = vmul.f32 %v616_v12, %v2068_v9  ;;  %v623_v53 = vmul.f32 %v622_v43, %v2102_v19 }
  0xda   :  { %v601_v51 = vadd.f32 %v599_v33, %v595_v49  ;;  %v602_v52 = vadd.f32 %v600_v34, %v596_v13  ;;  %v624_v54 = vmul.f32 %v622_v43, %v2104_v20  ;;  %v631_v57 = vmul.f32 %v630_v44, %v1810_v55 }
  0xdb   :  { %v632_v58 = vmul.f32 %v630_v44, %v1812_v56  ;;  %v634_v61 = vstv %s2156_s30  ;;  %v638_v62 = vstv %s2158_s8  ;;  %v644_v21 = vstv %s2164_s12  ;;  %s2304_s30 = sld [smem:[#allocation9 + $0x206]]  ;;  %s2306_s8 = sld [smem:[#allocation9 + $0x207]] }
  0xdc   :  { %v607_v5 = vadd.f32 %v605_v37, %v601_v51  ;;  %v608_v6 = vadd.f32 %v606_v38, %v602_v52  ;;  %v639_v15 = vmul.f32 %v638_v62, %v1842_v29  ;;  %v640_v16 = vmul.f32 %v638_v62, %v1844_v30  ;;  %s2312_s12 = sld [smem:[#allocation9 + $0x208]] }
  0xdd   :  { %v635_v17 = vadd.f32 %v634_v61, %v631_v57  ;;  %v636_v18 = vadd.f32 %v634_v61, %v632_v58  ;;  %v650_v22 = vstv %s2166_s13  ;;  %v645_v27 = vmul.f32 %v644_v21, %v1874_v59  ;;  %s2314_s13 = sld [smem:[#allocation9 + $0x209]] }
  0xde   :  { %v613_v23 = vadd.f32 %v611_v41, %v607_v5  ;;  %v614_v24 = vadd.f32 %v612_v42, %v608_v6  ;;  %v646_v28 = vmul.f32 %v644_v21, %v1876_v60  ;;  %v651_v1 = vmul.f32 %v650_v22, %v1906_v35 }
  0xdf   :  { %v641_v31 = vadd.f32 %v639_v15, %v635_v17  ;;  %v642_v0 = vadd.f32 %v640_v16, %v636_v18  ;;  %v652_v32 = vmul.f32 %v650_v22, %v1908_v36  ;;  %v656_v37 = vstv %s2176_s14  ;;  %s2320_s14 = sld [smem:[#allocation12]] }
  0xe0   :  { %v619_v33 = vadd.f32 %v617_v50, %v613_v23  ;;  %v620_v34 = vadd.f32 %v618_v14, %v614_v24  ;;  %v662_v38 = vstv %s2178_s15  ;;  %v657_v2 = vmul.f32 %v656_v37, %v1938_v7  ;;  %s2322_s15 = sld [smem:[#allocation13]] }
  0xe1   :  { %v647_v39 = vadd.f32 %v645_v27, %v641_v31  ;;  %v648_v40 = vadd.f32 %v646_v28, %v642_v0  ;;  %v658_v10 = vmul.f32 %v656_v37, %v1940_v11  ;;  %v663_v43 = vmul.f32 %v662_v38, %v1970_v45 }
  0xe2   :  { %v625_v3 = vadd.f32 %v623_v53, %v619_v33  ;;  %v626_v12 = vadd.f32 %v624_v54, %v620_v34  ;;  %v664_v44 = vmul.f32 %v662_v38, %v1972_v46  ;;  %v668_v41 = vstv %s2190_s16  ;;  %s2326_s16 = sld [smem:[#allocation12 + $0x1]] }
  0xe3   :  { %v653_v49 = vadd.f32 %v651_v1, %v647_v39  ;;  %v654_v13 = vadd.f32 %v652_v32, %v648_v40  ;;  %v674_v42 = vstv %s2192_s17  ;;  %v669_v51 = vmul.f32 %v668_v41, %v2002_v25  ;;  %s2328_s17 = sld [smem:[#allocation12 + $0x2]] }
  0xe4   :  { %v2222_v50 = vmax.f32 %v625_v3, 0.0  ;;  %v2224_v14 = vmax.f32 %v626_v12, 0.0  ;;  %v670_v52 = vmul.f32 %v668_v41, %v2004_v26  ;;  %v675_v57 = vmul.f32 %v674_v42, %v2034_v63 }
  0xe5   :  { %v659_v53 = vadd.f32 %v657_v2, %v653_v49  ;;  %v660_v54 = vadd.f32 %v658_v10, %v654_v13  ;;  %v676_v58 = vmul.f32 %v674_v42, %v2036_v4  ;;  %v680_v61 = vstv %s2198_s2  ;;  %s2332_s2 = sld [smem:[#allocation12 + $0x3]] }
  0xe6   :  { %v686_v62 = vstv %s2200_s4  ;;  %v694_v5 = vstv %s2204_s18  ;;  %v698_v6 = vstv %s2206_s19  ;;  %v681_v17 = vmul.f32 %v680_v61, %v2066_v8  ;;  %s2334_s4 = sld [smem:[#allocation12 + $0x4]]  ;;  %s2350_s18 = sld [smem:[#allocation12 + $0x80]] }
  0xe7   :  { %v665_v15 = vadd.f32 %v663_v43, %v659_v53  ;;  %v666_v16 = vadd.f32 %v664_v44, %v660_v54  ;;  %v682_v18 = vmul.f32 %v680_v61, %v2068_v9  ;;  %v687_v21 = vmul.f32 %v686_v62, %v2102_v19  ;;  %s2352_s19 = sld [smem:[#allocation13 + $0x1]] }
  0xe8   :  { %v688_v22 = vmul.f32 %v686_v62, %v2104_v20  ;;  %v695_v23 = vmul.f32 %v694_v5, %v1810_v55  ;;  %v696_v24 = vmul.f32 %v694_v5, %v1812_v56  ;;  %v702_v31 = vstv %s2214_s0  ;;  %s2360_s0 = sld [smem:[#allocation12 + $0x81]] }
  0xe9   :  { %v671_v27 = vadd.f32 %v669_v51, %v665_v15  ;;  %v672_v28 = vadd.f32 %v670_v52, %v666_v16  ;;  %v708_v0 = vstv %s2216_s1  ;;  %v703_v33 = vmul.f32 %v702_v31, %v1842_v29  ;;  %s2362_s1 = sld [smem:[#allocation12 + $0x82]] }
  0xea   :  { %v699_v1 = vadd.f32 %v698_v6, %v695_v23  ;;  %v700_v32 = vadd.f32 %v698_v6, %v696_v24  ;;  %v704_v34 = vmul.f32 %v702_v31, %v1844_v30  ;;  %v709_v39 = vmul.f32 %v708_v0, %v1874_v59 }
  0xeb   :  { %v677_v37 = vadd.f32 %v675_v57, %v671_v27  ;;  %v678_v38 = vadd.f32 %v676_v58, %v672_v28  ;;  %v710_v40 = vmul.f32 %v708_v0, %v1876_v60  ;;  %v714_v3 = vstv %s2228_s3  ;;  %s2374_s3 = sld [smem:[#allocation12 + $0x83]] }
  0xec   :  { %v705_v2 = vadd.f32 %v703_v33, %v699_v1  ;;  %v706_v10 = vadd.f32 %v704_v34, %v700_v32  ;;  %v720_v12 = vstv %s2230_s20  ;;  %v715_v49 = vmul.f32 %v714_v3, %v1906_v35  ;;  %s2376_s20 = sld [smem:[#allocation12 + $0x84]] }
  0xed   :  { %v683_v43 = vadd.f32 %v681_v17, %v677_v37  ;;  %v684_v44 = vadd.f32 %v682_v18, %v678_v38  ;;  %v716_v13 = vmul.f32 %v714_v3, %v1908_v36  ;;  %v721_v51 = vmul.f32 %v720_v12, %v1938_v7 }
  0xee   :  { %v711_v41 = vadd.f32 %v709_v39, %v705_v2  ;;  %v712_v42 = vadd.f32 %v710_v40, %v706_v10  ;;  %v722_v52 = vmul.f32 %v720_v12, %v1940_v11  ;;  %v726_v57 = vstv %s2240_s21  ;;  %s2384_s21 = sld [smem:[#allocation12 + $0x100]] }
  0xef   :  { %v689_v53 = vadd.f32 %v687_v21, %v683_v43  ;;  %v690_v54 = vadd.f32 %v688_v22, %v684_v44  ;;  %v732_v58 = vstv %s2242_s22  ;;  %v727_v5 = vmul.f32 %v726_v57, %v1970_v45  ;;  %s2386_s22 = sld [smem:[#allocation13 + $0x2]] }
  0xf0   :  { %v717_v61 = vadd.f32 %v715_v49, %v711_v41  ;;  %v718_v62 = vadd.f32 %v716_v13, %v712_v42  ;;  %v728_v6 = vmul.f32 %v726_v57, %v1972_v46  ;;  %v733_v17 = vmul.f32 %v732_v58, %v2002_v25 }
  0xf1   :  { %v2280_v15 = vmax.f32 %v689_v53, 0.0  ;;  %v2282_v16 = vmax.f32 %v690_v54, 0.0  ;;  %v734_v18 = vmul.f32 %v732_v58, %v2004_v26  ;;  %v738_v23 = vstv %s2252_s23  ;;  %s2390_s23 = sld [smem:[#allocation12 + $0x101]] }
  0xf2   :  { %v723_v21 = vadd.f32 %v721_v51, %v717_v61  ;;  %v724_v22 = vadd.f32 %v722_v52, %v718_v62  ;;  %v744_v24 = vstv %s2254_s24  ;;  %v739_v27 = vmul.f32 %v738_v23, %v2034_v63  ;;  %s2392_s24 = sld [smem:[#allocation12 + $0x102]] }
  0xf3   :  { %v740_v28 = vmul.f32 %v738_v23, %v2036_v4  ;;  %v745_v31 = vmul.f32 %v744_v24, %v2066_v8  ;;  %v746_v0 = vmul.f32 %v744_v24, %v2068_v9  ;;  %v750_v33 = vstv %s2260_s25  ;;  %s2398_s25 = sld [smem:[#allocation12 + $0x103]] }
  0xf4   :  { %v729_v1 = vadd.f32 %v727_v5, %v723_v21  ;;  %v730_v32 = vadd.f32 %v728_v6, %v724_v22  ;;  %v758_v34 = vstv %s2262_s26  ;;  %v751_v37 = vmul.f32 %v750_v33, %v2102_v19  ;;  %s2400_s26 = sld [smem:[#allocation12 + $0x104]] }
  0xf5   :  { %v752_v38 = vmul.f32 %v750_v33, %v2104_v20  ;;  %v759_v39 = vmul.f32 %v758_v34, %v1810_v55  ;;  %v760_v40 = vmul.f32 %v758_v34, %v1812_v56  ;;  %v762_v3 = vstv %s2268_s27  ;;  %s2412_s27 = sld [smem:[#allocation12 + $0x180]] }
  0xf6   :  { %v735_v2 = vadd.f32 %v733_v17, %v729_v1  ;;  %v736_v10 = vadd.f32 %v734_v18, %v730_v32  ;;  %v766_v12 = vstv %s2270_s5  ;;  %v772_v51 = vstv %s2276_s7  ;;  %s2414_s5 = sld [smem:[#allocation13 + $0x3]]  ;;  %s2418_s7 = sld [smem:[#allocation12 + $0x181]] }
  0xf7   :  { %v763_v43 = vadd.f32 %v762_v3, %v759_v39  ;;  %v764_v44 = vadd.f32 %v762_v3, %v760_v40  ;;  %v767_v49 = vmul.f32 %v766_v12, %v1842_v29  ;;  %v768_v13 = vmul.f32 %v766_v12, %v1844_v30 }
  0xf8   :  { %v741_v41 = vadd.f32 %v739_v27, %v735_v2  ;;  %v742_v42 = vadd.f32 %v740_v28, %v736_v10  ;;  %v778_v55 = vstv %s2278_s28  ;;  %v773_v53 = vmul.f32 %v772_v51, %v1874_v59  ;;  %s2420_s28 = sld [smem:[#allocation12 + $0x182]] }
  0xf9   :  { %v769_v56 = vadd.f32 %v767_v49, %v763_v43  ;;  %v770_v52 = vadd.f32 %v768_v13, %v764_v44  ;;  %v774_v54 = vmul.f32 %v772_v51, %v1876_v60  ;;  %v779_v30 = vmul.f32 %v778_v55, %v1906_v35 }
  0xfa   :  { %v747_v57 = vadd.f32 %v745_v31, %v741_v41  ;;  %v748_v29 = vadd.f32 %v746_v0, %v742_v42  ;;  %v780_v58 = vmul.f32 %v778_v55, %v1908_v36  ;;  %v784_v5 = vstv %s2292_s6  ;;  %s2434_s6 = sld [smem:[#allocation12 + $0x183]] }
  0xfb   :  { %v775_v61 = vadd.f32 %v773_v53, %v769_v56  ;;  %v776_v62 = vadd.f32 %v774_v54, %v770_v52  ;;  %v790_v6 = vstv %s2294_s29  ;;  %v785_v35 = vmul.f32 %v784_v5, %v1938_v7  ;;  %s2436_s29 = sld [smem:[#allocation12 + $0x184]] }
  0xfc   :  { %v753_v59 = vadd.f32 %v751_v37, %v747_v57  ;;  %v754_v60 = vadd.f32 %v752_v38, %v748_v29  ;;  %v786_v36 = vmul.f32 %v784_v5, %v1940_v11  ;;  %v791_v21 = vmul.f32 %v790_v6, %v1970_v45 }
  0xfd   :  { %v781_v17 = vadd.f32 %v779_v30, %v775_v61  ;;  %v782_v18 = vadd.f32 %v780_v58, %v776_v62  ;;  %v792_v22 = vmul.f32 %v790_v6, %v1972_v46  ;;  %v796_v27 = vstv %s2304_s30  ;;  %s2438_s30 = sld [smem:[#allocation12 + $0x200]] }
  0xfe   :  { %v2338_v23 = vmax.f32 %v753_v59, 0.0  ;;  %v2340_v24 = vmax.f32 %v754_v60, 0.0  ;;  %v802_v7 = vstv %s2306_s8  ;;  %v797_v31 = vmul.f32 %v796_v27, %v2002_v25  ;;  %s2440_s8 = sld [smem:[#allocation13 + $0x4]] }
  0xff   :  { %v787_v28 = vadd.f32 %v785_v35, %v781_v17  ;;  %v788_v11 = vadd.f32 %v786_v36, %v782_v18  ;;  %v798_v0 = vmul.f32 %v796_v27, %v2004_v26  ;;  %v803_v1 = vmul.f32 %v802_v7, %v2034_v63 }
 0x100   :  { %v804_v45 = vmul.f32 %v802_v7, %v2036_v4  ;;  %v808_v32 = vstv %s2312_s12  ;;  %v814_v46 = vstv %s2314_s13  ;;  %v822_v37 = vstv %s2320_s14  ;;  %s2458_s12 = sld [smem:[#allocation12 + $0x201]]  ;;  %s2460_s13 = sld [smem:[#allocation12 + $0x202]] }
 0x101   :  { %v793_v33 = vadd.f32 %v791_v21, %v787_v28  ;;  %v794_v34 = vadd.f32 %v792_v22, %v788_v11  ;;  %v809_v25 = vmul.f32 %v808_v32, %v2066_v8  ;;  %v810_v26 = vmul.f32 %v808_v32, %v2068_v9  ;;  %s2468_s14 = sld [smem:[#allocation12 + $0x203]] }
 0x102   :  { %v815_v63 = vmul.f32 %v814_v46, %v2102_v19  ;;  %v816_v4 = vmul.f32 %v814_v46, %v2104_v20  ;;  %v826_v38 = vstv %s2322_s15  ;;  %v823_v2 = vmul.f32 %v822_v37, %v2172_v47  ;;  %s2470_s15 = sld [smem:[#allocation12 + $0x204]] }
 0x103   :  { %v799_v39 = vadd.f32 %v797_v31, %v793_v33  ;;  %v800_v40 = vadd.f32 %v798_v0, %v794_v34  ;;  %v824_v10 = vmul.f32 %v822_v37, %v2174_v48  ;;  %v830_v3 = vstv %s2326_s16  ;;  %s2480_s16 = sld [smem:[#allocation15]] }
 0x104   :  { %v836_v8 = vstv %s2328_s17  ;;  %v842_v12 = vstv %s2332_s2  ;;  %v848_v9 = vstv %s2334_s4  ;;  %v827_v20 = vadd.f32 %v826_v38, %v823_v2  ;;  %s2482_s17 = sld [smem:[#allocation16]]  ;;  %s2488_s2 = sld [smem:[#allocation15 + $0x1]] }
 0x105   :  { %v805_v43 = vadd.f32 %v803_v1, %v799_v39  ;;  %v806_v19 = vadd.f32 %v804_v45, %v800_v40  ;;  %v828_v44 = vadd.f32 %v826_v38, %v824_v10  ;;  %v831_v49 = vmul.f32 %v830_v3, %v2222_v50  ;;  %s2490_s4 = sld [smem:[#allocation15 + $0x2]] }
 0x106   :  { %v832_v13 = vmul.f32 %v830_v3, %v2224_v14  ;;  %v837_v41 = vmul.f32 %v836_v8, %v2280_v15  ;;  %v838_v42 = vmul.f32 %v836_v8, %v2282_v16  ;;  %v843_v56 = vmul.f32 %v842_v12, %v2338_v23 }
 0x107   :  { %v811_v51 = vadd.f32 %v809_v25, %v805_v43  ;;  %v812_v55 = vadd.f32 %v810_v26, %v806_v19  ;;  %v844_v52 = vmul.f32 %v842_v12, %v2340_v24  ;;  %v833_v53 = vadd.f32 %v831_v49, %v827_v20 }
 0x108   :  { %v834_v54 = vadd.f32 %v832_v13, %v828_v44  ;;  %v856_v57 = vstv %s2350_s18  ;;  %v860_v29 = vstv %s2352_s19  ;;  %v864_v59 = vstv %s2360_s0  ;;  %s2500_s18 = sld [smem:[#allocation15 + $0x3]]  ;;  %s2502_s19 = sld [smem:[#allocation15 + $0x4]] }
 0x109   :  { %v817_v30 = vadd.f32 %v815_v63, %v811_v51  ;;  %v818_v58 = vadd.f32 %v816_v4, %v812_v55  ;;  %v857_v61 = vmul.f32 %v856_v57, %v2172_v47  ;;  %v858_v62 = vmul.f32 %v856_v57, %v2174_v48  ;;  %s2508_s0 = sld [smem:[#allocation15 + $0x80]] }
 0x10a   :  { %v839_v5 = vadd.f32 %v837_v41, %v833_v53  ;;  %v840_v6 = vadd.f32 %v838_v42, %v834_v54  ;;  %v870_v60 = vstv %s2362_s1  ;;  %v865_v27 = vmul.f32 %v864_v59, %v2222_v50  ;;  %s2510_s1 = sld [smem:[#allocation16 + $0x1]] }
 0x10b   :  { %v2394_v35 = vmax.f32 %v817_v30, 0.0  ;;  %v2396_v36 = vmax.f32 %v818_v58, 0.0  ;;  %v861_v17 = vadd.f32 %v860_v29, %v857_v61  ;;  %v862_v18 = vadd.f32 %v860_v29, %v858_v62 }
 0x10c   :  { %v845_v21 = vadd.f32 %v843_v56, %v839_v5  ;;  %v846_v22 = vadd.f32 %v844_v52, %v840_v6  ;;  %v866_v7 = vmul.f32 %v864_v59, %v2224_v14  ;;  %v871_v31 = vmul.f32 %v870_v60, %v2280_v15 }
 0x10d   :  { %v849_v28 = vmul.f32 %v848_v9, %v2394_v35  ;;  %v850_v11 = vmul.f32 %v848_v9, %v2396_v36  ;;  %v872_v0 = vmul.f32 %v870_v60, %v2282_v16  ;;  %v867_v1 = vadd.f32 %v865_v27, %v861_v17 }
 0x10e   :  { %v868_v45 = vadd.f32 %v866_v7, %v862_v18  ;;  %v876_v32 = vstv %s2374_s3  ;;  %v882_v46 = vstv %s2376_s20  ;;  %v890_v2 = vstv %s2384_s21  ;;  %s2520_s3 = sld [smem:[#allocation15 + $0x81]]  ;;  %s2522_s20 = sld [smem:[#allocation15 + $0x82]] }
 0x10f   :  { %v851_v33 = vadd.f32 %v849_v28, %v845_v21  ;;  %v852_v34 = vadd.f32 %v850_v11, %v846_v22  ;;  %v877_v25 = vmul.f32 %v876_v32, %v2338_v23  ;;  %v878_v26 = vmul.f32 %v876_v32, %v2340_v24  ;;  %s2532_s21 = sld [smem:[#allocation15 + $0x83]] }
 0x110   :  { %v873_v63 = vadd.f32 %v871_v31, %v867_v1  ;;  %v874_v4 = vadd.f32 %v872_v0, %v868_v45  ;;  %v883_v37 = vmul.f32 %v882_v46, %v2394_v35  ;;  %v884_v38 = vmul.f32 %v882_v46, %v2396_v36 }
 0x111   :  { %v2422_v39 = vmax.f32 %v851_v33, 0.0  ;;  %v2424_v40 = vmax.f32 %v852_v34, 0.0  ;;  %v894_v10 = vstv %s2386_s22  ;;  %v891_v12 = vmul.f32 %v890_v2, %v2172_v47  ;;  %s2534_s22 = sld [smem:[#allocation15 + $0x84]] }
 0x112   :  { %v879_v3 = vadd.f32 %v877_v25, %v873_v63  ;;  %v880_v8 = vadd.f32 %v878_v26, %v874_v4  ;;  %v892_v9 = vmul.f32 %v890_v2, %v2174_v48  ;;  %v898_v43 = vstv %s2390_s23  ;;  %s2546_s23 = sld [smem:[#allocation15 + $0x100]] }
 0x113   :  { %v904_v19 = vstv %s2392_s24  ;;  %v910_v20 = vstv %s2398_s25  ;;  %v916_v44 = vstv %s2400_s26  ;;  %v895_v41 = vadd.f32 %v894_v10, %v891_v12  ;;  %s2548_s24 = sld [smem:[#allocation16 + $0x2]]  ;;  %s2552_s25 = sld [smem:[#allocation15 + $0x101]] }
 0x114   :  { %v885_v49 = vadd.f32 %v883_v37, %v879_v3  ;;  %v886_v13 = vadd.f32 %v884_v38, %v880_v8  ;;  %v896_v42 = vadd.f32 %v894_v10, %v892_v9  ;;  %v899_v51 = vmul.f32 %v898_v43, %v2222_v50  ;;  %s2554_s26 = sld [smem:[#allocation15 + $0x102]] }
 0x115   :  { %v900_v55 = vmul.f32 %v898_v43, %v2224_v14  ;;  %v905_v56 = vmul.f32 %v904_v19, %v2280_v15  ;;  %v906_v52 = vmul.f32 %v904_v19, %v2282_v16  ;;  %v911_v57 = vmul.f32 %v910_v20, %v2338_v23 }
 0x116   :  { %v2446_v53 = vmax.f32 %v885_v49, 0.0  ;;  %v2448_v54 = vmax.f32 %v886_v13, 0.0  ;;  %v912_v29 = vmul.f32 %v910_v20, %v2340_v24  ;;  %v901_v30 = vadd.f32 %v899_v51, %v895_v41 }
 0x117   :  { %v902_v58 = vadd.f32 %v900_v55, %v896_v42  ;;  %v917_v61 = vmul.f32 %v916_v44, %v2394_v35  ;;  %v918_v62 = vmul.f32 %v916_v44, %v2396_v36  ;;  %v924_v5 = vstv %s2412_s27  ;;  %s2564_s27 = sld [smem:[#allocation15 + $0x103]] }
 0x118   :  { %v928_v6 = vstv %s2414_s5  ;;  %v932_v59 = vstv %s2418_s7  ;;  %v938_v60 = vstv %s2420_s28  ;;  %v907_v17 = vadd.f32 %v905_v56, %v901_v30  ;;  %s2566_s5 = sld [smem:[#allocation15 + $0x104]]  ;;  %s2580_s7 = sld [smem:[#allocation15 + $0x180]] }
 0x119   :  { %v908_v18 = vadd.f32 %v906_v52, %v902_v58  ;;  %v925_v21 = vmul.f32 %v924_v5, %v2172_v47  ;;  %v926_v22 = vmul.f32 %v924_v5, %v2174_v48  ;;  %v933_v27 = vmul.f32 %v932_v59, %v2222_v50  ;;  %s2582_s28 = sld [smem:[#allocation16 + $0x3]] }
 0x11a   :  { %v934_v7 = vmul.f32 %v932_v59, %v2224_v14  ;;  %v939_v28 = vmul.f32 %v938_v60, %v2280_v15  ;;  %v940_v11 = vmul.f32 %v938_v60, %v2282_v16  ;;  %v913_v31 = vadd.f32 %v911_v57, %v907_v17 }
 0x11b   :  { %v914_v0 = vadd.f32 %v912_v29, %v908_v18  ;;  %v929_v1 = vadd.f32 %v928_v6, %v925_v21  ;;  %v930_v45 = vadd.f32 %v928_v6, %v926_v22  ;;  %v944_v32 = vstv %s2434_s6  ;;  %s2586_s6 = sld [smem:[#allocation15 + $0x181]] }
 0x11c   :  { %v950_v46 = vstv %s2436_s29  ;;  %v958_v33 = vstv %s2438_s30  ;;  %v962_v34 = vstv %s2440_s8  ;;  %v919_v25 = vadd.f32 %v917_v61, %v913_v31  ;;  %s2588_s29 = sld [smem:[#allocation15 + $0x182]]  ;;  %s2598_s30 = sld [smem:[#allocation15 + $0x183]] }
 0x11d   :  { %v920_v26 = vadd.f32 %v918_v62, %v914_v0  ;;  %v935_v63 = vadd.f32 %v933_v27, %v929_v1  ;;  %v936_v4 = vadd.f32 %v934_v7, %v930_v45  ;;  %v945_v37 = vmul.f32 %v944_v32, %v2338_v23  ;;  %s2600_s8 = sld [smem:[#allocation15 + $0x184]] }
 0x11e   :  { %v946_v38 = vmul.f32 %v944_v32, %v2340_v24  ;;  %v951_v2 = vmul.f32 %v950_v46, %v2394_v35  ;;  %v952_v10 = vmul.f32 %v950_v46, %v2396_v36  ;;  %v2484_v3 = vmax.f32 %v919_v25, 0.0 }
 0x11f   :  { %v2486_v8 = vmax.f32 %v920_v26, 0.0  ;;  %v941_v12 = vadd.f32 %v939_v28, %v935_v63  ;;  %v942_v9 = vadd.f32 %v940_v11, %v936_v4  ;;  %v959_v43 = vmul.f32 %v958_v33, %v2172_v47 }
 0x120   :  { %v960_v19 = vmul.f32 %v958_v33, %v2174_v48  ;;  %v966_v20 = vstv %s2458_s12  ;;  %v972_v44 = vstv %s2460_s13  ;;  %v978_v57 = vstv %s2468_s14  ;;  %s2614_s12 = sld [smem:[#allocation15 + $0x200]]  ;;  %s2616_s13 = sld [smem:[#allocation16 + $0x4]] }
 0x121   :  { %v947_v49 = vadd.f32 %v945_v37, %v941_v12  ;;  %v948_v13 = vadd.f32 %v946_v38, %v942_v9  ;;  %v967_v41 = vmul.f32 %v966_v20, %v2222_v50  ;;  %v968_v42 = vmul.f32 %v966_v20, %v2224_v14  ;;  %s2620_s14 = sld [smem:[#allocation15 + $0x201]] }
 0x122   :  { %v963_v51 = vadd.f32 %v962_v34, %v959_v43  ;;  %v964_v55 = vadd.f32 %v962_v34, %v960_v19  ;;  %v973_v56 = vmul.f32 %v972_v44, %v2280_v15  ;;  %v974_v52 = vmul.f32 %v972_v44, %v2282_v16 }
 0x123   :  { %v953_v47 = vadd.f32 %v951_v2, %v947_v49  ;;  %v954_v48 = vadd.f32 %v952_v10, %v948_v13  ;;  %v984_v29 = vstv %s2470_s15  ;;  %v979_v14 = vmul.f32 %v978_v57, %v2338_v23  ;;  %s2622_s15 = sld [smem:[#allocation15 + $0x202]] }
 0x124   :  { %v969_v30 = vadd.f32 %v967_v41, %v963_v51  ;;  %v970_v50 = vadd.f32 %v968_v42, %v964_v55  ;;  %v980_v58 = vmul.f32 %v978_v57, %v2340_v24  ;;  %v985_v61 = vmul.f32 %v984_v29, %v2394_v35 }
 0x125   :  { %v2512_v15 = vmax.f32 %v953_v47, 0.0  ;;  %v2514_v16 = vmax.f32 %v954_v48, 0.0  ;;  %v986_v62 = vmul.f32 %v984_v29, %v2396_v36  ;;  %v992_v59 = vstv %s2480_s16  ;;  %s2632_s16 = sld [smem:[#allocation15 + $0x203]] }
 0x126   :  { %v975_v5 = vadd.f32 %v973_v56, %v969_v30  ;;  %v976_v6 = vadd.f32 %v974_v52, %v970_v50  ;;  %v996_v23 = vstv %s2482_s17  ;;  %v993_v24 = vmul.f32 %v992_v59, %v2422_v39  ;;  %s2634_s17 = sld [smem:[#allocation15 + $0x204]] }
 0x127   :  { %v994_v60 = vmul.f32 %v992_v59, %v2424_v40  ;;  %v1000_v17 = vstv %s2488_s2  ;;  %v1006_v18 = vstv %s2490_s4  ;;  %v1012_v1 = vstv %s2500_s18  ;;  %s1637_s2 = smov [#allocation18]  }
 0x128   :  { %v981_v21 = vadd.f32 %v979_v14, %v975_v5  ;;  %v982_v35 = vadd.f32 %v980_v58, %v976_v6  ;;  %v1001_v36 = vmul.f32 %v1000_v17, %v2446_v53  ;;  %v1002_v22 = vmul.f32 %v1000_v17, %v2448_v54  ;;  %s1244_s4 = sshll.u32 %s1637_s2, 4  ;;  %s1245_s4 = int_to_ptr.vmem [resolvable:$true] %s1244_s4 }
 0x129   :  { %v997_v27 = vadd.f32 %v996_v23, %v993_v24  ;;  %v998_v7 = vadd.f32 %v996_v23, %v994_v60  ;;  %v1007_v28 = vmul.f32 %v1006_v18, %v2484_v3  ;;  %v1008_v11 = vmul.f32 %v1006_v18, %v2486_v8  ;;  %s1590_s18 = scalar_lea.vmem %s1245_s4, 1280  ;;  %p1595_p7 = scmp.lt.s32.totalorder %s1245_s4, %s1245_s4 }
 0x12a   :  { %v987_v31 = vadd.f32 %v985_v61, %v981_v21  ;;  %v988_v0 = vadd.f32 %v986_v62, %v982_v35  ;;  %v1018_v45 = vstv %s2502_s19  ;;  %v1013_v33 = vmul.f32 %v1012_v1, %v2512_v15  ;;  %p1591_p6 = scmp.ne.s32.totalorder %s1245_s4, %s1590_s18  ;;  %p1596_p8 = scmp.lt.s32.totalorder %s1590_s18, %s1590_s18 }
 0x12b   :  { %v1003_v32 = vadd.f32 %v1001_v36, %v997_v27  ;;  %v1004_v46 = vadd.f32 %v1002_v22, %v998_v7  ;;  %v1014_v34 = vmul.f32 %v1012_v1, %v2514_v16  ;;  %v1026_v63 = vstv %s2508_s0 }
 0x12c   :  { %v2540_v25 = vmax.f32 %v987_v31, 0.0  ;;  %v2542_v26 = vmax.f32 %v988_v0, 0.0  ;;  %v1030_v4 = vstv %s2510_s1  ;;  %v1027_v2 = vmul.f32 %v1026_v63, %v2422_v39  ;;  %p1597_p9 = por %p1596_p8, %p1595_p7 }
 0x12d   :  { %v1009_v37 = vadd.f32 %v1007_v28, %v1003_v32  ;;  %v1010_v38 = vadd.f32 %v1008_v11, %v1004_v46  ;;  %v1028_v10 = vmul.f32 %v1026_v63, %v2424_v40  ;;  %v1034_v43 = vstv %s2520_s3 }
 0x12e   :  { %v1019_v12 = vmul.f32 %v1018_v45, %v2540_v25  ;;  %v1020_v9 = vmul.f32 %v1018_v45, %v2542_v26  ;;  %v1040_v19 = vstv %s2522_s20  ;;  %v1031_v49 = vadd.f32 %v1030_v4, %v1027_v2  ;;  %p1598_p10 = pnand %p1597_p9, %p1591_p6 }
 0x12f   :  { %v1015_v20 = vadd.f32 %v1013_v33, %v1009_v37  ;;  %v1016_v44 = vadd.f32 %v1014_v34, %v1010_v38  ;;  %v1032_v13 = vadd.f32 %v1030_v4, %v1028_v10  ;;  %v1035_v41 = vmul.f32 %v1034_v43, %v2446_v53 }
 0x130   :  { %v1036_v42 = vmul.f32 %v1034_v43, %v2448_v54  ;;  %v1041_v51 = vmul.f32 %v1040_v19, %v2484_v3  ;;  %v1042_v55 = vmul.f32 %v1040_v19, %v2486_v8  ;;  %v1046_v47 = vstv %s2532_s21 }
 0x131   :  { %v2568_v56 = vadd.f32 %v1019_v12, %v1015_v20  ;;  %v2570_v52 = vadd.f32 %v1020_v9, %v1016_v44  ;;  %v1052_v48 = vstv %s2534_s22  ;;  %v1037_v57 = vadd.f32 %v1035_v41, %v1031_v49 }
 0x132   :  { %v1038_v29 = vadd.f32 %v1036_v42, %v1032_v13  ;;  %v1047_v30 = vmul.f32 %v1046_v47, %v2512_v15  ;;  %v1048_v50 = vmul.f32 %v1046_v47, %v2514_v16  ;;  %v1053_v61 = vmul.f32 %v1052_v48, %v2540_v25 }
 0x133   :  { %v1023_v14 = vmax.f32 %v2568_v56, 0.0  ;;  %v1024_v58 = vmax.f32 %v2570_v52, 0.0  ;;  %v1054_v62 = vmul.f32 %v1052_v48, %v2542_v26  ;;  %v1043_v5 = vadd.f32 %v1041_v51, %v1037_v57 }
 0x134   :  { %v1044_v6 = vadd.f32 %v1042_v55, %v1038_v29  ;;  %v1060_v59 = vstv %s2546_s23  ;;  %v1064_v23 = vstv %s2548_s24  ;;  %v1068_v17 = vstv %s2552_s25 }
 0x135   :  { %v1061_v24 = vmul.f32 %v1060_v59, %v2422_v39  ;;  %v1062_v60 = vmul.f32 %v1060_v59, %v2424_v40  ;;  %v1074_v18 = vstv %s2554_s26  ;;  %v1049_v21 = vadd.f32 %v1047_v30, %v1043_v5 }
 0x136   :  { %v1050_v35 = vadd.f32 %v1048_v50, %v1044_v6  ;;  %v1069_v36 = vmul.f32 %v1068_v17, %v2446_v53  ;;  %v1070_v22 = vmul.f32 %v1068_v17, %v2448_v54  ;;  %v1075_v28 = vmul.f32 %v1074_v18, %v2484_v3 }
 0x137   :  { %v1065_v27 = vadd.f32 %v1064_v23, %v1061_v24  ;;  %v1066_v7 = vadd.f32 %v1064_v23, %v1062_v60  ;;  %v1076_v11 = vmul.f32 %v1074_v18, %v2486_v8  ;;  %v2602_v31 = vadd.f32 %v1053_v61, %v1049_v21 }
 0x138   :  { %v2604_v0 = vadd.f32 %v1054_v62, %v1050_v35  ;;  %v1080_v1 = vstv %s2564_s27  ;;  %v1086_v45 = vstv %s2566_s5  ;;  %v1094_v12 = vstv %s2580_s7 }
 0x139   :  { %v1071_v32 = vadd.f32 %v1069_v36, %v1065_v27  ;;  %v1072_v46 = vadd.f32 %v1070_v22, %v1066_v7  ;;  %v1081_v33 = vmul.f32 %v1080_v1, %v2512_v15  ;;  %v1082_v34 = vmul.f32 %v1080_v1, %v2514_v16 }
 0x13a   :  { %v1057_v63 = vmax.f32 %v2602_v31, 0.0  ;;  %v1058_v4 = vmax.f32 %v2604_v0, 0.0  ;;  %v1087_v37 = vmul.f32 %v1086_v45, %v2540_v25  ;;  %v1088_v38 = vmul.f32 %v1086_v45, %v2542_v26 }
 0x13b   :  { %v1077_v2 = vadd.f32 %v1075_v28, %v1071_v32  ;;  %v1078_v10 = vadd.f32 %v1076_v11, %v1072_v46  ;;  %v1098_v9 = vstv %s2582_s28  ;;  %v1095_v43 = vmul.f32 %v1094_v12, %v2422_v39 }
 0x13c   :  { %v1096_v19 = vmul.f32 %v1094_v12, %v2424_v40  ;;  %v1102_v20 = vstv %s2586_s6  ;;  %v1108_v44 = vstv %s2588_s29  ;;  %v1114_v30 = vstv %s2598_s30 }
 0x13d   :  { %v1083_v49 = vadd.f32 %v1081_v33, %v1077_v2  ;;  %v1084_v13 = vadd.f32 %v1082_v34, %v1078_v10  ;;  %v1103_v41 = vmul.f32 %v1102_v20, %v2446_v53  ;;  %v1104_v42 = vmul.f32 %v1102_v20, %v2448_v54 }
 0x13e   :  { %v1099_v51 = vadd.f32 %v1098_v9, %v1095_v43  ;;  %v1100_v55 = vadd.f32 %v1098_v9, %v1096_v19  ;;  %v1109_v47 = vmul.f32 %v1108_v44, %v2484_v3  ;;  %v1110_v48 = vmul.f32 %v1108_v44, %v2486_v8 }
 0x13f   :  { %v1089_v57 = vadd.f32 %v1087_v37, %v1083_v49  ;;  %v1090_v29 = vadd.f32 %v1088_v38, %v1084_v13  ;;  %v1120_v50 = vstv %s2600_s8  ;;  %v1115_v5 = vmul.f32 %v1114_v30, %v2512_v15 }
 0x140   :  { %v1105_v61 = vadd.f32 %v1103_v41, %v1099_v51  ;;  %v1106_v62 = vadd.f32 %v1104_v42, %v1100_v55  ;;  %v1116_v6 = vmul.f32 %v1114_v30, %v2514_v16  ;;  %v1121_v24 = vmul.f32 %v1120_v50, %v2540_v25 }
 0x141   :  { %v1091_v59 = vmax.f32 %v1089_v57, 0.0  ;;  %v1092_v23 = vmax.f32 %v1090_v29, 0.0  ;;  %v1122_v60 = vmul.f32 %v1120_v50, %v2542_v26  ;;  %v1128_v21 = vstv %s2614_s12 }
 0x142   :  { %v1111_v17 = vadd.f32 %v1109_v47, %v1105_v61  ;;  %v1112_v18 = vadd.f32 %v1110_v48, %v1106_v62  ;;  %v1132_v35 = vstv %s2616_s13  ;;  %v1129_v36 = vmul.f32 %v1128_v21, %v2422_v39 }
 0x143   :  { %v1130_v22 = vmul.f32 %v1128_v21, %v2424_v40  ;;  %v1136_v27 = vstv %s2620_s14  ;;  %v1142_v7 = vstv %s2622_s15  ;;  %v1148_v2 = vstv %s2632_s16 }
 0x144   :  { %v1117_v28 = vadd.f32 %v1115_v5, %v1111_v17  ;;  %v1118_v11 = vadd.f32 %v1116_v6, %v1112_v18  ;;  %v1137_v1 = vmul.f32 %v1136_v27, %v2446_v53  ;;  %v1138_v45 = vmul.f32 %v1136_v27, %v2448_v54 }
 0x145   :  { %v1133_v32 = vadd.f32 %v1132_v35, %v1129_v36  ;;  %v1134_v46 = vadd.f32 %v1132_v35, %v1130_v22  ;;  %v1143_v33 = vmul.f32 %v1142_v7, %v2484_v3  ;;  %v1144_v34 = vmul.f32 %v1142_v7, %v2486_v8 }
 0x146   :  { %v1123_v37 = vadd.f32 %v1121_v24, %v1117_v28  ;;  %v1124_v38 = vadd.f32 %v1122_v60, %v1118_v11  ;;  %v1154_v39 = vstv %s2634_s17  ;;  %v1149_v12 = vmul.f32 %v1148_v2, %v2512_v15 }
 0x147   :  { %v1139_v10 = vadd.f32 %v1137_v1, %v1133_v32  ;;  %v1140_v40 = vadd.f32 %v1138_v45, %v1134_v46  ;;  %v1150_v9 = vmul.f32 %v1148_v2, %v2514_v16  ;;  %v1155_v54 = vmul.f32 %v1154_v39, %v2540_v25 }
 0x148   :  { %v1125_v43 = vmax.f32 %v1123_v37, 0.0  ;;  %v1126_v53 = vmax.f32 %v1124_v38, 0.0  ;;  %v1156_v19 = vmul.f32 %v1154_v39, %v2542_v26  ;;  %v1161_v8 = vmax.f32 %v1023_v14, %v1057_v63 }
 0x149   :  { %v1145_v20 = vadd.f32 %v1143_v33, %v1139_v10  ;;  %v1146_v3 = vadd.f32 %v1144_v34, %v1140_v40  ;;  %v1162_v15 = vmax.f32 %v1024_v58, %v1058_v4 }
 0x14a   :  { %v1163_v49 = vmax.f32 %v1161_v8, %v1091_v59 }
 0x14b   :  { %v1151_v44 = vadd.f32 %v1149_v12, %v1145_v20  ;;  %v1152_v16 = vadd.f32 %v1150_v9, %v1146_v3  ;;  %v1164_v13 = vmax.f32 %v1162_v15, %v1092_v23 }
 0x14c   :  { %v1165_v42 = vmax.f32 %v1163_v49, %v1125_v43 }
 0x14d   :  { %v1157_v41 = vadd.f32 %v1155_v54, %v1151_v44  ;;  %v1158_v25 = vadd.f32 %v1156_v19, %v1152_v16  ;;  %v1166_v26 = vmax.f32 %v1164_v13, %v1126_v53 }
 0x14f   :  { %v1159_v51 = vmax.f32 %v1157_v41, 0.0  ;;  %v1160_v55 = vmax.f32 %v1158_v25, 0.0 }
 0x151   :  { %v1167_v47 = vmax.f32 %v1165_v42, %v1159_v51  ;;  %v1168_v48 = vmax.f32 %v1166_v26, %v1160_v55 }
 0x153   :  { %v1169_v57 = vsub.f32 %v1023_v14, %v1167_v47  ;;  %v1170_v29 = vsub.f32 %v1024_v58, %v1168_v48  ;;  %v1175_v30 = vsub.f32 %v1057_v63, %v1167_v47  ;;  %v1176_v50 = vsub.f32 %v1058_v4, %v1168_v48 }
 0x154   :  { %v1181_v61 = vsub.f32 %v1091_v59, %v1167_v47  ;;  %v1182_v62 = vsub.f32 %v1092_v23, %v1168_v48  ;;  %v1187_v60 = vsub.f32 %v1125_v43, %v1167_v47  ;;  %v1188_v18 = vsub.f32 %v1126_v53, %v1168_v48 }
 0x155   :  { %v1171_v5 = vmul.f32 1.442695, %v1169_v57  ;;  %v1173_v6 = vmul.f32 1.442695, %v1170_v29  ;;  %v1177_v24 = vmul.f32 1.442695, %v1175_v30  ;;  %v1193_v14 = vsub.f32 %v1159_v51, %v1167_v47 }
 0x156   :  { %v1179_v17 = vmul.f32 1.442695, %v1176_v50  ;;  %v1183_v56 = vmul.f32 1.442695, %v1181_v61  ;;  %v1185_v52 = vmul.f32 1.442695, %v1182_v62  ;;  %v1194_v58 = vsub.f32 %v1160_v55, %v1168_v48 }
 0x157   :  { %1448 = vpow2.f32 %v1171_v5  ;;  %v1189_v31 = vmul.f32 1.442695, %v1187_v60  ;;  %v1191_v63 = vmul.f32 1.442695, %v1188_v18  ;;  %v1195_v0 = vmul.f32 1.442695, %v1193_v14 }
 0x158   :  { %1450 = vpow2.f32 %v1173_v6  ;;  %v1197_v4 = vmul.f32 1.442695, %v1194_v58 }
 0x159   :  { %1452 = vpow2.f32 %v1177_v24 }
 0x15a   :  { %1454 = vpow2.f32 %v1179_v17 }
 0x15b   :  { %1456 = vpow2.f32 %v1183_v56 }
 0x15c   :  { %1458 = vpow2.f32 %v1185_v52 }
 0x15d   :  { %1460 = vpow2.f32 %v1189_v31 }
 0x15e   :  { %1462 = vpow2.f32 %v1191_v63 }
 0x15f   :  { %1464 = vpow2.f32 %v1195_v0 }
 0x160   :  { %1466 = vpow2.f32 %v1197_v4 }
 0x161   :  { %v1449_v59 = vpop.eup %1448 }
 0x162   :  { %v1451_v23 = vpop.eup %1450 }
 0x163   :  { %v1453_v21 = vpop.eup %1452 }
 0x164   :  { %v1455_v35 = vpop.eup %1454  ;;  %v1199_v36 = vadd.f32 %v1453_v21, %v1449_v59 }
 0x165   :  { %v1457_v22 = vpop.eup %1456  ;;  %v1200_v27 = vadd.f32 %v1455_v35, %v1451_v23 }
 0x166   :  { %v1459_v7 = vpop.eup %1458  ;;  %v1201_v28 = vadd.f32 %v1457_v22, %v1199_v36 }
 0x167   :  { %v1461_v11 = vpop.eup %1460  ;;  %v1202_v1 = vadd.f32 %v1459_v7, %v1200_v27 }
 0x168   :  { %v1463_v45 = vpop.eup %1462  ;;  %v1203_v32 = vadd.f32 %v1461_v11, %v1201_v28 }
 0x169   :  { %v1465_v46 = vpop.eup %1464  ;;  %v1204_v33 = vadd.f32 %v1463_v45, %v1202_v1 }
 0x16a   :  { %v1467_v34 = vpop.eup %1466  ;;  %v1205_v37 = vadd.f32 %v1465_v46, %v1203_v32 }
 0x16b   :  { %v1206_v38 = vadd.f32 %v1467_v34, %v1204_v33 }
 0x16c   :  { %1468 = vrcp.f32 %v1205_v37 }
 0x16d   :  { %1470 = vrcp.f32 %v1206_v38 }
 0x176   :  { %v1469_v2 = vpop.eup %1468 }
 0x177   :  { %v1471_v39 = vpop.eup %1470  ;;  %v1209_v10 = vmul.f32 %v1469_v2, %v1205_v37 }
 0x178   :  { %v1210_v40 = vmul.f32 %v1471_v39, %v1206_v38 }
 0x179   :  { %v1211_v12 = vsub.f32 2.0, %v1209_v10 }
 0x17a   :  { %v1212_v9 = vsub.f32 2.0, %v1210_v40 }
 0x17b   :  { %v1213_v43 = vmul.f32 %v1469_v2, %v1211_v12 }
 0x17c   :  { %v1214_v53 = vmul.f32 %v1471_v39, %v1212_v9 }
 0x17d   :  { %v1215_v54 = vmul.f32 %v1449_v59, %v1213_v43  ;;  %v1219_v19 = vmul.f32 %v1453_v21, %v1213_v43  ;;  %v1224_v20 = vmul.f32 %v1457_v22, %v1213_v43  ;;  %v1229_v3 = vmul.f32 %v1461_v11, %v1213_v43 }
 0x17e   :  { %v1216_v8 = vmul.f32 %v1451_v23, %v1214_v53  ;;  %v1220_v15 = vmul.f32 %v1455_v35, %v1214_v53  ;;  %v1225_v44 = vmul.f32 %v1459_v7, %v1214_v53  ;;  %v1230_v16 = vmul.f32 %v1463_v45, %v1214_v53 }
 0x17f   :  { %1217 = vst [vmem:[#allocation18] sm:$0xff] %v1215_v54  ;;  %1222 = vst [vmem:[#allocation18 + $0x10] sm:$0xff] %v1219_v19  ;;  %v1234_v49 = vmul.f32 %v1465_v46, %v1213_v43  ;;  %v1235_v13 = vmul.f32 %v1467_v34, %v1214_v53 }
 0x180   :  { %1227 = vst [vmem:[#allocation18 + $0x20] sm:$0xff] %v1224_v20  ;;  %1232 = vst [vmem:[#allocation18 + $0x30] sm:$0xff] %v1229_v3 }
 0x181   :  { %1218 = vst [vmem:[#allocation18 + $0x8] sm:$0xff] %v1216_v8  ;;  %1223 = vst [vmem:[#allocation18 + $0x18] sm:$0xff] %v1220_v15 }
 0x182   :  { %1228 = vst [vmem:[#allocation18 + $0x28] sm:$0xff] %v1225_v44  ;;  %1233 = vst [vmem:[#allocation18 + $0x38] sm:$0xff] %v1230_v16 }
 0x183   :  { %1237 = vst [vmem:[#allocation18 + $0x40] sm:$0xff] %v1234_v49  ;;  %1238 = vst [vmem:[#allocation18 + $0x48] sm:$0xff] %v1235_v13 }
 0x184   :  { %1601 = shalt.err (!%p1598_p10)
}
 0x185   :  { %s1602_s1 = scalar_lea.hbm %s2698_s9, 1280 }
 0x186   :  { %p1603_p11 = scmp.ne.s32.totalorder %s2698_s9, %s1602_s1  ;;  %p1606_p12 = scmp.lt.u32.totalorder %s1602_s1, %s2698_s9 }
 0x188   :  { %p1608_p13 = pnand %p1606_p12, %p1603_p11 }
 0x18a   :  { %1611 = shalt.err (!%p1608_p13)
}
 0x18b   :  { %1250 = dma.vmem_to_hbm [thread:$0]  %s1245_s4, 1280, %s2698_s9, [#allocation4], %s1630_s10, %s1630_s10, %s1631_s11  }
 0x18c   :  { %1624 = dma.done.wait [#allocation4], 1280  }
 0x18d   :  { %1625 = vsyncadd [#allocation4], 4294966016 }
 0x18e   :  { %1254 = vsyncpa [#allocation3], 1 }
 0x18f   :  { %1255 = vsyncpa [#allocation4], 1 }
 0x190   :  { %1256 = vsyncpa [#allocation5], 1 }
 0x191   :  { %1257 = vsyncpa [#allocation8], 1 }
 0x192   :  { %1258 = vsyncpa [#allocation11], 1 }
 0x193   :  { %1259 = vsyncpa [#allocation14], 1 }
 0x194   :  { %1260 = vsyncpa [#allocation17], 1 }

</bundles_post_ra>
